<compile_context>
chip_gen: v7x
topology: tpu7x:2x2x1
jax: 0.10.0
libtpu: 0.0.40
codegen_flags: <defaults>
</compile_context>

<pallas_src>
import functools

import jax
import jax.numpy as jnp
from jax.experimental import pallas as pl
from jax.experimental.pallas import tpu as pltpu


def rnn_kernel(x_ref, p_ref, hn_ref, *, T, I, H, use_mxu_recurrence):
    """Writes the final hidden state of a single-layer tanh RNN.

    x_ref : (B, T*I) f32  batch_first input, free-reshaped to 2D
            (row b = [x_{b,0} | x_{b,1} | ... | x_{b,T-1}] along lanes).
    p_ref : (P, H)  f32   parameter slab: rows [0, I) = W_ih^T,
            rows [I, I+H) = W_hh^T, row I+H = b_ih + b_hh, rest zero pad.
    hn_ref: (B, H)  f32   output, final hidden state (== PyTorch hn[0]).
    """
    B = hn_ref.shape[0]

    xv = x_ref[...]                       # (B, T*I), single load
    wih = p_ref[0:I, :]                   # (I, H)  W_ih^T   (one-time load)
    bias = p_ref[I + H:I + H + 1, :]      # (1, H)  b_ih + b_hh

    # Hoisted input projections (+ fused bias). Independent of h -> off the
    # serial recurrence chain; the scheduler overlaps them with the recurrence.
    xw = [
        jnp.dot(xv[:, t * I:(t + 1) * I], wih,
                preferred_element_type=jnp.float32) + bias
        for t in range(T)
    ]

    if use_mxu_recurrence:
        # v7x: the MRB (addressed result RAM) makes the tiny per-step matmul's
        # result latency cheap; keep the recurrence on the MXU.
        whh = p_ref[I:I + H, :]           # (H, H)  W_hh^T

        def recur(h):
            return jnp.dot(h, whh, preferred_element_type=jnp.float32)
    else:
        # v5e / v6e: MXU result path is a sequential MRF pop sitting on the
        # serial h-dependence every step; a short VPU broadcast-FMA chain is
        # cheaper and uses otherwise-idle VALU slots.
        whh_rows = [p_ref[I + k:I + k + 1, :] for k in range(H)]  # (1, H) each

        def recur(h):
            acc = h[:, 0:1] * whh_rows[0]
            for k in range(1, H):
                acc = acc + h[:, k:k + 1] * whh_rows[k]
            return acc

    # Serial recurrence, statically unrolled (T small, known at trace time) so
    # the LLO scheduler can overlap MXU / EUP(tanh) work across steps.
    # TODO(synk): if T ever grows beyond ~64, switch to
    # lax.fori_loop(..., unroll=8) to bound vreg live ranges and code size.
    h = jnp.zeros((B, H), jnp.float32)
    for t in range(T):
        h = jnp.tanh(xw[t] + recur(h))

    hn_ref[...] = h.astype(hn_ref.dtype)


def _mxu_recurrence_is_best():
    # Keep the tiny recurrence matmul on the MXU only where the result path is
    # an addressed MRB (v7x); on v5e/v6e the VPU FMA chain avoids the MRF pop.
    try:
        kind = jax.devices()[0].device_kind.lower()
    except Exception:
        return False
    return ("v7" in kind) or ("7x" in kind)


@functools.partial(jax.jit, static_argnames=("use_mxu_recurrence",))
def _rnn_forward_impl(x, w_ih, w_hh, b_ih, b_hh, *, use_mxu_recurrence):
    B, T, I = x.shape
    H = w_ih.shape[0]

    # Free reshape of the contiguous batch_first input: no standalone layout
    # pass / HBM roundtrip on x.
    x2d = x.reshape(B, T * I)

    # One consolidated parameter slab -> a single small DMA instead of three.
    rows = I + H + 1
    pad = (-rows) % 8
    parts = [jnp.transpose(w_ih), jnp.transpose(w_hh), (b_ih + b_hh)[None, :]]
    if pad:
        parts.append(jnp.zeros((pad, H), jnp.float32))
    params = jnp.concatenate(parts, axis=0)            # (P, H)

    kernel = functools.partial(
        rnn_kernel, T=T, I=I, H=H, use_mxu_recurrence=use_mxu_recurrence)

    vmem = pl.BlockSpec(memory_space=pltpu.MemorySpace.VMEM)
    # Whole problem (~2 KB) lives in VMEM; no grid. If B/T ever scale, add a
    # 'parallel' batch grid axis (2 TCs on v7x) and an 'arbitrary' T axis with
    # a carried-h scratch, sizing x tiles against v7x's 64 MiB VMEM.
    return pl.pallas_call(
        kernel,
        out_shape=jax.ShapeDtypeStruct((B, H), jnp.float32),
        in_specs=[vmem, vmem],
        out_specs=vmem,
    )(x2d, params)


def rnn_forward(x, w_ih, w_hh, b_ih, b_hh):
    """x: (B, T, I) f32, batch_first. Returns hn: (B, H) f32 (== hn[0])."""
    return _rnn_forward_impl(
        x, w_ih, w_hh, b_ih, b_hh,
        use_mxu_recurrence=_mxu_recurrence_is_best())


def rnn_reference(x, w_ih, w_hh, b_ih, b_hh):
    """Pure-JAX reference matching torch.nn.RNN (tanh) final hidden state."""
    B, T, I = x.shape
    H = w_ih.shape[0]
    h = jnp.zeros((B, H), jnp.float32)
    for t in range(T):
        h = jnp.tanh(x[:, t, :] @ w_ih.T + b_ih + h @ w_hh.T + b_hh)
    return h


if __name__ == "__main__":
    B, T, I, H = 2, 8, 28, 10

    key = jax.random.PRNGKey(0)
    kx, k1, k2, k3, k4 = jax.random.split(key, 5)

    # Deterministic synthetic params (uniform in [-1/sqrt(H), 1/sqrt(H)],
    # mirroring nn.RNN's default init scheme).
    bound = 1.0 / jnp.sqrt(jnp.float32(H))
    x = jax.random.normal(kx, (B, T, I), dtype=jnp.float32)
    w_ih = jax.random.uniform(k1, (H, I), jnp.float32, -bound, bound)
    w_hh = jax.random.uniform(k2, (H, H), jnp.float32, -bound, bound)
    b_ih = jax.random.uniform(k3, (H,), jnp.float32, -bound, bound)
    b_hh = jax.random.uniform(k4, (H,), jnp.float32, -bound, bound)

    hn = rnn_forward(x, w_ih, w_hh, b_ih, b_hh)
    hn = jax.block_until_ready(hn)

    ref = rnn_reference(x, w_ih, w_hh, b_ih, b_hh)
    assert hn.shape == (B, H)
    assert jnp.allclose(hn, ref, atol=1e-5, rtol=1e-5)

    print("KERNEL_OK")
</pallas_src>

<mosaic_0001>
module attributes {stable_mosaic.version = 11 : i64} {
  func.func @rnn_kernel(%arg0: memref<2x224xf32, #tpu.memory_space<vmem>>, %arg1: memref<40x10xf32, #tpu.memory_space<vmem>>, %arg2: memref<2x10xf32, #tpu.memory_space<vmem>>) attributes {dimension_semantics = [], scalar_prefetch = 0 : i64, scratch_operands = 0 : i64, tpu.core_type = #tpu.core_type<tc>} {
    %c0 = arith.constant 0 : index
    %c0_0 = arith.constant 0 : index
    %0 = vector.load %arg0[%c0, %c0_0] : memref<2x224xf32, #tpu.memory_space<vmem>>, vector<2x224xf32>
    %c0_1 = arith.constant 0 : index
    %c0_2 = arith.constant 0 : index
    %1 = vector.load %arg1[%c0_1, %c0_2] : memref<40x10xf32, #tpu.memory_space<vmem>>, vector<28x10xf32>
    %c38 = arith.constant 38 : index
    %c0_3 = arith.constant 0 : index
    %2 = vector.load %arg1[%c38, %c0_3] : memref<40x10xf32, #tpu.memory_space<vmem>>, vector<1x10xf32>
    %3 = vector.extract_strided_slice %0 {offsets = [0, 0], sizes = [2, 28], strides = [1, 1]} : vector<2x224xf32> to vector<2x28xf32>
    %cst = arith.constant dense<0.000000e+00> : vector<2x10xf32>
    %4 = tpu.matmul %3, %1, %cst {dimension_numbers = #tpu.dot_dimension_numbers<[1], [0], [0], [1], [0, 0, 1, 1], [], []>} : vector<2x28xf32>, vector<28x10xf32>, vector<2x10xf32> -> vector<2x10xf32>
    %5 = vector.broadcast %2 : vector<1x10xf32> to vector<2x10xf32>
    %6 = arith.addf %4, %5 : vector<2x10xf32>
    %7 = vector.extract_strided_slice %0 {offsets = [0, 28], sizes = [2, 28], strides = [1, 1]} : vector<2x224xf32> to vector<2x28xf32>
    %cst_4 = arith.constant dense<0.000000e+00> : vector<2x10xf32>
    %8 = tpu.matmul %7, %1, %cst_4 {dimension_numbers = #tpu.dot_dimension_numbers<[1], [0], [0], [1], [0, 0, 1, 1], [], []>} : vector<2x28xf32>, vector<28x10xf32>, vector<2x10xf32> -> vector<2x10xf32>
    %9 = vector.broadcast %2 : vector<1x10xf32> to vector<2x10xf32>
    %10 = arith.addf %8, %9 : vector<2x10xf32>
    %11 = vector.extract_strided_slice %0 {offsets = [0, 56], sizes = [2, 28], strides = [1, 1]} : vector<2x224xf32> to vector<2x28xf32>
    %cst_5 = arith.constant dense<0.000000e+00> : vector<2x10xf32>
    %12 = tpu.matmul %11, %1, %cst_5 {dimension_numbers = #tpu.dot_dimension_numbers<[1], [0], [0], [1], [0, 0, 1, 1], [], []>} : vector<2x28xf32>, vector<28x10xf32>, vector<2x10xf32> -> vector<2x10xf32>
    %13 = vector.broadcast %2 : vector<1x10xf32> to vector<2x10xf32>
    %14 = arith.addf %12, %13 : vector<2x10xf32>
    %15 = vector.extract_strided_slice %0 {offsets = [0, 84], sizes = [2, 28], strides = [1, 1]} : vector<2x224xf32> to vector<2x28xf32>
    %cst_6 = arith.constant dense<0.000000e+00> : vector<2x10xf32>
    %16 = tpu.matmul %15, %1, %cst_6 {dimension_numbers = #tpu.dot_dimension_numbers<[1], [0], [0], [1], [0, 0, 1, 1], [], []>} : vector<2x28xf32>, vector<28x10xf32>, vector<2x10xf32> -> vector<2x10xf32>
    %17 = vector.broadcast %2 : vector<1x10xf32> to vector<2x10xf32>
    %18 = arith.addf %16, %17 : vector<2x10xf32>
    %19 = vector.extract_strided_slice %0 {offsets = [0, 112], sizes = [2, 28], strides = [1, 1]} : vector<2x224xf32> to vector<2x28xf32>
    %cst_7 = arith.constant dense<0.000000e+00> : vector<2x10xf32>
    %20 = tpu.matmul %19, %1, %cst_7 {dimension_numbers = #tpu.dot_dimension_numbers<[1], [0], [0], [1], [0, 0, 1, 1], [], []>} : vector<2x28xf32>, vector<28x10xf32>, vector<2x10xf32> -> vector<2x10xf32>
    %21 = vector.broadcast %2 : vector<1x10xf32> to vector<2x10xf32>
    %22 = arith.addf %20, %21 : vector<2x10xf32>
    %23 = vector.extract_strided_slice %0 {offsets = [0, 140], sizes = [2, 28], strides = [1, 1]} : vector<2x224xf32> to vector<2x28xf32>
    %cst_8 = arith.constant dense<0.000000e+00> : vector<2x10xf32>
    %24 = tpu.matmul %23, %1, %cst_8 {dimension_numbers = #tpu.dot_dimension_numbers<[1], [0], [0], [1], [0, 0, 1, 1], [], []>} : vector<2x28xf32>, vector<28x10xf32>, vector<2x10xf32> -> vector<2x10xf32>
    %25 = vector.broadcast %2 : vector<1x10xf32> to vector<2x10xf32>
    %26 = arith.addf %24, %25 : vector<2x10xf32>
    %27 = vector.extract_strided_slice %0 {offsets = [0, 168], sizes = [2, 28], strides = [1, 1]} : vector<2x224xf32> to vector<2x28xf32>
    %cst_9 = arith.constant dense<0.000000e+00> : vector<2x10xf32>
    %28 = tpu.matmul %27, %1, %cst_9 {dimension_numbers = #tpu.dot_dimension_numbers<[1], [0], [0], [1], [0, 0, 1, 1], [], []>} : vector<2x28xf32>, vector<28x10xf32>, vector<2x10xf32> -> vector<2x10xf32>
    %29 = vector.broadcast %2 : vector<1x10xf32> to vector<2x10xf32>
    %30 = arith.addf %28, %29 : vector<2x10xf32>
    %31 = vector.extract_strided_slice %0 {offsets = [0, 196], sizes = [2, 28], strides = [1, 1]} : vector<2x224xf32> to vector<2x28xf32>
    %cst_10 = arith.constant dense<0.000000e+00> : vector<2x10xf32>
    %32 = tpu.matmul %31, %1, %cst_10 {dimension_numbers = #tpu.dot_dimension_numbers<[1], [0], [0], [1], [0, 0, 1, 1], [], []>} : vector<2x28xf32>, vector<28x10xf32>, vector<2x10xf32> -> vector<2x10xf32>
    %33 = vector.broadcast %2 : vector<1x10xf32> to vector<2x10xf32>
    %34 = arith.addf %32, %33 : vector<2x10xf32>
    %c28 = arith.constant 28 : index
    %c0_11 = arith.constant 0 : index
    %35 = vector.load %arg1[%c28, %c0_11] : memref<40x10xf32, #tpu.memory_space<vmem>>, vector<1x10xf32>
    %c29 = arith.constant 29 : index
    %c0_12 = arith.constant 0 : index
    %36 = vector.load %arg1[%c29, %c0_12] : memref<40x10xf32, #tpu.memory_space<vmem>>, vector<1x10xf32>
    %c30 = arith.constant 30 : index
    %c0_13 = arith.constant 0 : index
    %37 = vector.load %arg1[%c30, %c0_13] : memref<40x10xf32, #tpu.memory_space<vmem>>, vector<1x10xf32>
    %c31 = arith.constant 31 : index
    %c0_14 = arith.constant 0 : index
    %38 = vector.load %arg1[%c31, %c0_14] : memref<40x10xf32, #tpu.memory_space<vmem>>, vector<1x10xf32>
    %c32 = arith.constant 32 : index
    %c0_15 = arith.constant 0 : index
    %39 = vector.load %arg1[%c32, %c0_15] : memref<40x10xf32, #tpu.memory_space<vmem>>, vector<1x10xf32>
    %c33 = arith.constant 33 : index
    %c0_16 = arith.constant 0 : index
    %40 = vector.load %arg1[%c33, %c0_16] : memref<40x10xf32, #tpu.memory_space<vmem>>, vector<1x10xf32>
    %c34 = arith.constant 34 : index
    %c0_17 = arith.constant 0 : index
    %41 = vector.load %arg1[%c34, %c0_17] : memref<40x10xf32, #tpu.memory_space<vmem>>, vector<1x10xf32>
    %c35 = arith.constant 35 : index
    %c0_18 = arith.constant 0 : index
    %42 = vector.load %arg1[%c35, %c0_18] : memref<40x10xf32, #tpu.memory_space<vmem>>, vector<1x10xf32>
    %c36 = arith.constant 36 : index
    %c0_19 = arith.constant 0 : index
    %43 = vector.load %arg1[%c36, %c0_19] : memref<40x10xf32, #tpu.memory_space<vmem>>, vector<1x10xf32>
    %c37 = arith.constant 37 : index
    %c0_20 = arith.constant 0 : index
    %44 = vector.load %arg1[%c37, %c0_20] : memref<40x10xf32, #tpu.memory_space<vmem>>, vector<1x10xf32>
    %cst_21 = arith.constant 0.000000e+00 : f32
    %45 = vector.broadcast %cst_21 : f32 to vector<2x10xf32>
    %46 = vector.extract_strided_slice %45 {offsets = [0, 0], sizes = [2, 1], strides = [1, 1]} : vector<2x10xf32> to vector<2x1xf32>
    %47 = vector.broadcast %46 : vector<2x1xf32> to vector<2x10xf32>
    %48 = vector.broadcast %35 : vector<1x10xf32> to vector<2x10xf32>
    %49 = arith.mulf %47, %48 : vector<2x10xf32>
    %50 = vector.extract_strided_slice %45 {offsets = [0, 1], sizes = [2, 1], strides = [1, 1]} : vector<2x10xf32> to vector<2x1xf32>
    %51 = vector.broadcast %50 : vector<2x1xf32> to vector<2x10xf32>
    %52 = vector.broadcast %36 : vector<1x10xf32> to vector<2x10xf32>
    %53 = arith.mulf %51, %52 : vector<2x10xf32>
    %54 = arith.addf %49, %53 : vector<2x10xf32>
    %55 = vector.extract_strided_slice %45 {offsets = [0, 2], sizes = [2, 1], strides = [1, 1]} : vector<2x10xf32> to vector<2x1xf32>
    %56 = vector.broadcast %55 : vector<2x1xf32> to vector<2x10xf32>
    %57 = vector.broadcast %37 : vector<1x10xf32> to vector<2x10xf32>
    %58 = arith.mulf %56, %57 : vector<2x10xf32>
    %59 = arith.addf %54, %58 : vector<2x10xf32>
    %60 = vector.extract_strided_slice %45 {offsets = [0, 3], sizes = [2, 1], strides = [1, 1]} : vector<2x10xf32> to vector<2x1xf32>
    %61 = vector.broadcast %60 : vector<2x1xf32> to vector<2x10xf32>
    %62 = vector.broadcast %38 : vector<1x10xf32> to vector<2x10xf32>
    %63 = arith.mulf %61, %62 : vector<2x10xf32>
    %64 = arith.addf %59, %63 : vector<2x10xf32>
    %65 = vector.extract_strided_slice %45 {offsets = [0, 4], sizes = [2, 1], strides = [1, 1]} : vector<2x10xf32> to vector<2x1xf32>
    %66 = vector.broadcast %65 : vector<2x1xf32> to vector<2x10xf32>
    %67 = vector.broadcast %39 : vector<1x10xf32> to vector<2x10xf32>
    %68 = arith.mulf %66, %67 : vector<2x10xf32>
    %69 = arith.addf %64, %68 : vector<2x10xf32>
    %70 = vector.extract_strided_slice %45 {offsets = [0, 5], sizes = [2, 1], strides = [1, 1]} : vector<2x10xf32> to vector<2x1xf32>
    %71 = vector.broadcast %70 : vector<2x1xf32> to vector<2x10xf32>
    %72 = vector.broadcast %40 : vector<1x10xf32> to vector<2x10xf32>
    %73 = arith.mulf %71, %72 : vector<2x10xf32>
    %74 = arith.addf %69, %73 : vector<2x10xf32>
    %75 = vector.extract_strided_slice %45 {offsets = [0, 6], sizes = [2, 1], strides = [1, 1]} : vector<2x10xf32> to vector<2x1xf32>
    %76 = vector.broadcast %75 : vector<2x1xf32> to vector<2x10xf32>
    %77 = vector.broadcast %41 : vector<1x10xf32> to vector<2x10xf32>
    %78 = arith.mulf %76, %77 : vector<2x10xf32>
    %79 = arith.addf %74, %78 : vector<2x10xf32>
    %80 = vector.extract_strided_slice %45 {offsets = [0, 7], sizes = [2, 1], strides = [1, 1]} : vector<2x10xf32> to vector<2x1xf32>
    %81 = vector.broadcast %80 : vector<2x1xf32> to vector<2x10xf32>
    %82 = vector.broadcast %42 : vector<1x10xf32> to vector<2x10xf32>
    %83 = arith.mulf %81, %82 : vector<2x10xf32>
    %84 = arith.addf %79, %83 : vector<2x10xf32>
    %85 = vector.extract_strided_slice %45 {offsets = [0, 8], sizes = [2, 1], strides = [1, 1]} : vector<2x10xf32> to vector<2x1xf32>
    %86 = vector.broadcast %85 : vector<2x1xf32> to vector<2x10xf32>
    %87 = vector.broadcast %43 : vector<1x10xf32> to vector<2x10xf32>
    %88 = arith.mulf %86, %87 : vector<2x10xf32>
    %89 = arith.addf %84, %88 : vector<2x10xf32>
    %90 = vector.extract_strided_slice %45 {offsets = [0, 9], sizes = [2, 1], strides = [1, 1]} : vector<2x10xf32> to vector<2x1xf32>
    %91 = vector.broadcast %90 : vector<2x1xf32> to vector<2x10xf32>
    %92 = vector.broadcast %44 : vector<1x10xf32> to vector<2x10xf32>
    %93 = arith.mulf %91, %92 : vector<2x10xf32>
    %94 = arith.addf %89, %93 : vector<2x10xf32>
    %95 = arith.addf %6, %94 : vector<2x10xf32>
    %96 = math.tanh %95 : vector<2x10xf32>
    %97 = vector.extract_strided_slice %96 {offsets = [0, 0], sizes = [2, 1], strides = [1, 1]} : vector<2x10xf32> to vector<2x1xf32>
    %98 = vector.broadcast %97 : vector<2x1xf32> to vector<2x10xf32>
    %99 = vector.broadcast %35 : vector<1x10xf32> to vector<2x10xf32>
    %100 = arith.mulf %98, %99 : vector<2x10xf32>
    %101 = vector.extract_strided_slice %96 {offsets = [0, 1], sizes = [2, 1], strides = [1, 1]} : vector<2x10xf32> to vector<2x1xf32>
    %102 = vector.broadcast %101 : vector<2x1xf32> to vector<2x10xf32>
    %103 = vector.broadcast %36 : vector<1x10xf32> to vector<2x10xf32>
    %104 = arith.mulf %102, %103 : vector<2x10xf32>
    %105 = arith.addf %100, %104 : vector<2x10xf32>
    %106 = vector.extract_strided_slice %96 {offsets = [0, 2], sizes = [2, 1], strides = [1, 1]} : vector<2x10xf32> to vector<2x1xf32>
    %107 = vector.broadcast %106 : vector<2x1xf32> to vector<2x10xf32>
    %108 = vector.broadcast %37 : vector<1x10xf32> to vector<2x10xf32>
    %109 = arith.mulf %107, %108 : vector<2x10xf32>
    %110 = arith.addf %105, %109 : vector<2x10xf32>
    %111 = vector.extract_strided_slice %96 {offsets = [0, 3], sizes = [2, 1], strides = [1, 1]} : vector<2x10xf32> to vector<2x1xf32>
    %112 = vector.broadcast %111 : vector<2x1xf32> to vector<2x10xf32>
    %113 = vector.broadcast %38 : vector<1x10xf32> to vector<2x10xf32>
    %114 = arith.mulf %112, %113 : vector<2x10xf32>
    %115 = arith.addf %110, %114 : vector<2x10xf32>
    %116 = vector.extract_strided_slice %96 {offsets = [0, 4], sizes = [2, 1], strides = [1, 1]} : vector<2x10xf32> to vector<2x1xf32>
    %117 = vector.broadcast %116 : vector<2x1xf32> to vector<2x10xf32>
    %118 = vector.broadcast %39 : vector<1x10xf32> to vector<2x10xf32>
    %119 = arith.mulf %117, %118 : vector<2x10xf32>
    %120 = arith.addf %115, %119 : vector<2x10xf32>
    %121 = vector.extract_strided_slice %96 {offsets = [0, 5], sizes = [2, 1], strides = [1, 1]} : vector<2x10xf32> to vector<2x1xf32>
    %122 = vector.broadcast %121 : vector<2x1xf32> to vector<2x10xf32>
    %123 = vector.broadcast %40 : vector<1x10xf32> to vector<2x10xf32>
    %124 = arith.mulf %122, %123 : vector<2x10xf32>
    %125 = arith.addf %120, %124 : vector<2x10xf32>
    %126 = vector.extract_strided_slice %96 {offsets = [0, 6], sizes = [2, 1], strides = [1, 1]} : vector<2x10xf32> to vector<2x1xf32>
    %127 = vector.broadcast %126 : vector<2x1xf32> to vector<2x10xf32>
    %128 = vector.broadcast %41 : vector<1x10xf32> to vector<2x10xf32>
    %129 = arith.mulf %127, %128 : vector<2x10xf32>
    %130 = arith.addf %125, %129 : vector<2x10xf32>
    %131 = vector.extract_strided_slice %96 {offsets = [0, 7], sizes = [2, 1], strides = [1, 1]} : vector<2x10xf32> to vector<2x1xf32>
    %132 = vector.broadcast %131 : vector<2x1xf32> to vector<2x10xf32>
    %133 = vector.broadcast %42 : vector<1x10xf32> to vector<2x10xf32>
    %134 = arith.mulf %132, %133 : vector<2x10xf32>
    %135 = arith.addf %130, %134 : vector<2x10xf32>
    %136 = vector.extract_strided_slice %96 {offsets = [0, 8], sizes = [2, 1], strides = [1, 1]} : vector<2x10xf32> to vector<2x1xf32>
    %137 = vector.broadcast %136 : vector<2x1xf32> to vector<2x10xf32>
    %138 = vector.broadcast %43 : vector<1x10xf32> to vector<2x10xf32>
    %139 = arith.mulf %137, %138 : vector<2x10xf32>
    %140 = arith.addf %135, %139 : vector<2x10xf32>
    %141 = vector.extract_strided_slice %96 {offsets = [0, 9], sizes = [2, 1], strides = [1, 1]} : vector<2x10xf32> to vector<2x1xf32>
    %142 = vector.broadcast %141 : vector<2x1xf32> to vector<2x10xf32>
    %143 = vector.broadcast %44 : vector<1x10xf32> to vector<2x10xf32>
    %144 = arith.mulf %142, %143 : vector<2x10xf32>
    %145 = arith.addf %140, %144 : vector<2x10xf32>
    %146 = arith.addf %10, %145 : vector<2x10xf32>
    %147 = math.tanh %146 : vector<2x10xf32>
    %148 = vector.extract_strided_slice %147 {offsets = [0, 0], sizes = [2, 1], strides = [1, 1]} : vector<2x10xf32> to vector<2x1xf32>
    %149 = vector.broadcast %148 : vector<2x1xf32> to vector<2x10xf32>
    %150 = vector.broadcast %35 : vector<1x10xf32> to vector<2x10xf32>
    %151 = arith.mulf %149, %150 : vector<2x10xf32>
    %152 = vector.extract_strided_slice %147 {offsets = [0, 1], sizes = [2, 1], strides = [1, 1]} : vector<2x10xf32> to vector<2x1xf32>
    %153 = vector.broadcast %152 : vector<2x1xf32> to vector<2x10xf32>
    %154 = vector.broadcast %36 : vector<1x10xf32> to vector<2x10xf32>
    %155 = arith.mulf %153, %154 : vector<2x10xf32>
    %156 = arith.addf %151, %155 : vector<2x10xf32>
    %157 = vector.extract_strided_slice %147 {offsets = [0, 2], sizes = [2, 1], strides = [1, 1]} : vector<2x10xf32> to vector<2x1xf32>
    %158 = vector.broadcast %157 : vector<2x1xf32> to vector<2x10xf32>
    %159 = vector.broadcast %37 : vector<1x10xf32> to vector<2x10xf32>
    %160 = arith.mulf %158, %159 : vector<2x10xf32>
    %161 = arith.addf %156, %160 : vector<2x10xf32>
    %162 = vector.extract_strided_slice %147 {offsets = [0, 3], sizes = [2, 1], strides = [1, 1]} : vector<2x10xf32> to vector<2x1xf32>
    %163 = vector.broadcast %162 : vector<2x1xf32> to vector<2x10xf32>
    %164 = vector.broadcast %38 : vector<1x10xf32> to vector<2x10xf32>
    %165 = arith.mulf %163, %164 : vector<2x10xf32>
    %166 = arith.addf %161, %165 : vector<2x10xf32>
    %167 = vector.extract_strided_slice %147 {offsets = [0, 4], sizes = [2, 1], strides = [1, 1]} : vector<2x10xf32> to vector<2x1xf32>
    %168 = vector.broadcast %167 : vector<2x1xf32> to vector<2x10xf32>
    %169 = vector.broadcast %39 : vector<1x10xf32> to vector<2x10xf32>
    %170 = arith.mulf %168, %169 : vector<2x10xf32>
    %171 = arith.addf %166, %170 : vector<2x10xf32>
    %172 = vector.extract_strided_slice %147 {offsets = [0, 5], sizes = [2, 1], strides = [1, 1]} : vector<2x10xf32> to vector<2x1xf32>
    %173 = vector.broadcast %172 : vector<2x1xf32> to vector<2x10xf32>
    %174 = vector.broadcast %40 : vector<1x10xf32> to vector<2x10xf32>
    %175 = arith.mulf %173, %174 : vector<2x10xf32>
    %176 = arith.addf %171, %175 : vector<2x10xf32>
    %177 = vector.extract_strided_slice %147 {offsets = [0, 6], sizes = [2, 1], strides = [1, 1]} : vector<2x10xf32> to vector<2x1xf32>
    %178 = vector.broadcast %177 : vector<2x1xf32> to vector<2x10xf32>
    %179 = vector.broadcast %41 : vector<1x10xf32> to vector<2x10xf32>
    %180 = arith.mulf %178, %179 : vector<2x10xf32>
    %181 = arith.addf %176, %180 : vector<2x10xf32>
    %182 = vector.extract_strided_slice %147 {offsets = [0, 7], sizes = [2, 1], strides = [1, 1]} : vector<2x10xf32> to vector<2x1xf32>
    %183 = vector.broadcast %182 : vector<2x1xf32> to vector<2x10xf32>
    %184 = vector.broadcast %42 : vector<1x10xf32> to vector<2x10xf32>
    %185 = arith.mulf %183, %184 : vector<2x10xf32>
    %186 = arith.addf %181, %185 : vector<2x10xf32>
    %187 = vector.extract_strided_slice %147 {offsets = [0, 8], sizes = [2, 1], strides = [1, 1]} : vector<2x10xf32> to vector<2x1xf32>
    %188 = vector.broadcast %187 : vector<2x1xf32> to vector<2x10xf32>
    %189 = vector.broadcast %43 : vector<1x10xf32> to vector<2x10xf32>
    %190 = arith.mulf %188, %189 : vector<2x10xf32>
    %191 = arith.addf %186, %190 : vector<2x10xf32>
    %192 = vector.extract_strided_slice %147 {offsets = [0, 9], sizes = [2, 1], strides = [1, 1]} : vector<2x10xf32> to vector<2x1xf32>
    %193 = vector.broadcast %192 : vector<2x1xf32> to vector<2x10xf32>
    %194 = vector.broadcast %44 : vector<1x10xf32> to vector<2x10xf32>
    %195 = arith.mulf %193, %194 : vector<2x10xf32>
    %196 = arith.addf %191, %195 : vector<2x10xf32>
    %197 = arith.addf %14, %196 : vector<2x10xf32>
    %198 = math.tanh %197 : vector<2x10xf32>
    %199 = vector.extract_strided_slice %198 {offsets = [0, 0], sizes = [2, 1], strides = [1, 1]} : vector<2x10xf32> to vector<2x1xf32>
    %200 = vector.broadcast %199 : vector<2x1xf32> to vector<2x10xf32>
    %201 = vector.broadcast %35 : vector<1x10xf32> to vector<2x10xf32>
    %202 = arith.mulf %200, %201 : vector<2x10xf32>
    %203 = vector.extract_strided_slice %198 {offsets = [0, 1], sizes = [2, 1], strides = [1, 1]} : vector<2x10xf32> to vector<2x1xf32>
    %204 = vector.broadcast %203 : vector<2x1xf32> to vector<2x10xf32>
    %205 = vector.broadcast %36 : vector<1x10xf32> to vector<2x10xf32>
    %206 = arith.mulf %204, %205 : vector<2x10xf32>
    %207 = arith.addf %202, %206 : vector<2x10xf32>
    %208 = vector.extract_strided_slice %198 {offsets = [0, 2], sizes = [2, 1], strides = [1, 1]} : vector<2x10xf32> to vector<2x1xf32>
    %209 = vector.broadcast %208 : vector<2x1xf32> to vector<2x10xf32>
    %210 = vector.broadcast %37 : vector<1x10xf32> to vector<2x10xf32>
    %211 = arith.mulf %209, %210 : vector<2x10xf32>
    %212 = arith.addf %207, %211 : vector<2x10xf32>
    %213 = vector.extract_strided_slice %198 {offsets = [0, 3], sizes = [2, 1], strides = [1, 1]} : vector<2x10xf32> to vector<2x1xf32>
    %214 = vector.broadcast %213 : vector<2x1xf32> to vector<2x10xf32>
    %215 = vector.broadcast %38 : vector<1x10xf32> to vector<2x10xf32>
    %216 = arith.mulf %214, %215 : vector<2x10xf32>
    %217 = arith.addf %212, %216 : vector<2x10xf32>
    %218 = vector.extract_strided_slice %198 {offsets = [0, 4], sizes = [2, 1], strides = [1, 1]} : vector<2x10xf32> to vector<2x1xf32>
    %219 = vector.broadcast %218 : vector<2x1xf32> to vector<2x10xf32>
    %220 = vector.broadcast %39 : vector<1x10xf32> to vector<2x10xf32>
    %221 = arith.mulf %219, %220 : vector<2x10xf32>
    %222 = arith.addf %217, %221 : vector<2x10xf32>
    %223 = vector.extract_strided_slice %198 {offsets = [0, 5], sizes = [2, 1], strides = [1, 1]} : vector<2x10xf32> to vector<2x1xf32>
    %224 = vector.broadcast %223 : vector<2x1xf32> to vector<2x10xf32>
    %225 = vector.broadcast %40 : vector<1x10xf32> to vector<2x10xf32>
    %226 = arith.mulf %224, %225 : vector<2x10xf32>
    %227 = arith.addf %222, %226 : vector<2x10xf32>
    %228 = vector.extract_strided_slice %198 {offsets = [0, 6], sizes = [2, 1], strides = [1, 1]} : vector<2x10xf32> to vector<2x1xf32>
    %229 = vector.broadcast %228 : vector<2x1xf32> to vector<2x10xf32>
    %230 = vector.broadcast %41 : vector<1x10xf32> to vector<2x10xf32>
    %231 = arith.mulf %229, %230 : vector<2x10xf32>
    %232 = arith.addf %227, %231 : vector<2x10xf32>
    %233 = vector.extract_strided_slice %198 {offsets = [0, 7], sizes = [2, 1], strides = [1, 1]} : vector<2x10xf32> to vector<2x1xf32>
    %234 = vector.broadcast %233 : vector<2x1xf32> to vector<2x10xf32>
    %235 = vector.broadcast %42 : vector<1x10xf32> to vector<2x10xf32>
    %236 = arith.mulf %234, %235 : vector<2x10xf32>
    %237 = arith.addf %232, %236 : vector<2x10xf32>
    %238 = vector.extract_strided_slice %198 {offsets = [0, 8], sizes = [2, 1], strides = [1, 1]} : vector<2x10xf32> to vector<2x1xf32>
    %239 = vector.broadcast %238 : vector<2x1xf32> to vector<2x10xf32>
    %240 = vector.broadcast %43 : vector<1x10xf32> to vector<2x10xf32>
    %241 = arith.mulf %239, %240 : vector<2x10xf32>
    %242 = arith.addf %237, %241 : vector<2x10xf32>
    %243 = vector.extract_strided_slice %198 {offsets = [0, 9], sizes = [2, 1], strides = [1, 1]} : vector<2x10xf32> to vector<2x1xf32>
    %244 = vector.broadcast %243 : vector<2x1xf32> to vector<2x10xf32>
    %245 = vector.broadcast %44 : vector<1x10xf32> to vector<2x10xf32>
    %246 = arith.mulf %244, %245 : vector<2x10xf32>
    %247 = arith.addf %242, %246 : vector<2x10xf32>
    %248 = arith.addf %18, %247 : vector<2x10xf32>
    %249 = math.tanh %248 : vector<2x10xf32>
    %250 = vector.extract_strided_slice %249 {offsets = [0, 0], sizes = [2, 1], strides = [1, 1]} : vector<2x10xf32> to vector<2x1xf32>
    %251 = vector.broadcast %250 : vector<2x1xf32> to vector<2x10xf32>
    %252 = vector.broadcast %35 : vector<1x10xf32> to vector<2x10xf32>
    %253 = arith.mulf %251, %252 : vector<2x10xf32>
    %254 = vector.extract_strided_slice %249 {offsets = [0, 1], sizes = [2, 1], strides = [1, 1]} : vector<2x10xf32> to vector<2x1xf32>
    %255 = vector.broadcast %254 : vector<2x1xf32> to vector<2x10xf32>
    %256 = vector.broadcast %36 : vector<1x10xf32> to vector<2x10xf32>
    %257 = arith.mulf %255, %256 : vector<2x10xf32>
    %258 = arith.addf %253, %257 : vector<2x10xf32>
    %259 = vector.extract_strided_slice %249 {offsets = [0, 2], sizes = [2, 1], strides = [1, 1]} : vector<2x10xf32> to vector<2x1xf32>
    %260 = vector.broadcast %259 : vector<2x1xf32> to vector<2x10xf32>
    %261 = vector.broadcast %37 : vector<1x10xf32> to vector<2x10xf32>
    %262 = arith.mulf %260, %261 : vector<2x10xf32>
    %263 = arith.addf %258, %262 : vector<2x10xf32>
    %264 = vector.extract_strided_slice %249 {offsets = [0, 3], sizes = [2, 1], strides = [1, 1]} : vector<2x10xf32> to vector<2x1xf32>
    %265 = vector.broadcast %264 : vector<2x1xf32> to vector<2x10xf32>
    %266 = vector.broadcast %38 : vector<1x10xf32> to vector<2x10xf32>
    %267 = arith.mulf %265, %266 : vector<2x10xf32>
    %268 = arith.addf %263, %267 : vector<2x10xf32>
    %269 = vector.extract_strided_slice %249 {offsets = [0, 4], sizes = [2, 1], strides = [1, 1]} : vector<2x10xf32> to vector<2x1xf32>
    %270 = vector.broadcast %269 : vector<2x1xf32> to vector<2x10xf32>
    %271 = vector.broadcast %39 : vector<1x10xf32> to vector<2x10xf32>
    %272 = arith.mulf %270, %271 : vector<2x10xf32>
    %273 = arith.addf %268, %272 : vector<2x10xf32>
    %274 = vector.extract_strided_slice %249 {offsets = [0, 5], sizes = [2, 1], strides = [1, 1]} : vector<2x10xf32> to vector<2x1xf32>
    %275 = vector.broadcast %274 : vector<2x1xf32> to vector<2x10xf32>
    %276 = vector.broadcast %40 : vector<1x10xf32> to vector<2x10xf32>
    %277 = arith.mulf %275, %276 : vector<2x10xf32>
    %278 = arith.addf %273, %277 : vector<2x10xf32>
    %279 = vector.extract_strided_slice %249 {offsets = [0, 6], sizes = [2, 1], strides = [1, 1]} : vector<2x10xf32> to vector<2x1xf32>
    %280 = vector.broadcast %279 : vector<2x1xf32> to vector<2x10xf32>
    %281 = vector.broadcast %41 : vector<1x10xf32> to vector<2x10xf32>
    %282 = arith.mulf %280, %281 : vector<2x10xf32>
    %283 = arith.addf %278, %282 : vector<2x10xf32>
    %284 = vector.extract_strided_slice %249 {offsets = [0, 7], sizes = [2, 1], strides = [1, 1]} : vector<2x10xf32> to vector<2x1xf32>
    %285 = vector.broadcast %284 : vector<2x1xf32> to vector<2x10xf32>
    %286 = vector.broadcast %42 : vector<1x10xf32> to vector<2x10xf32>
    %287 = arith.mulf %285, %286 : vector<2x10xf32>
    %288 = arith.addf %283, %287 : vector<2x10xf32>
    %289 = vector.extract_strided_slice %249 {offsets = [0, 8], sizes = [2, 1], strides = [1, 1]} : vector<2x10xf32> to vector<2x1xf32>
    %290 = vector.broadcast %289 : vector<2x1xf32> to vector<2x10xf32>
    %291 = vector.broadcast %43 : vector<1x10xf32> to vector<2x10xf32>
    %292 = arith.mulf %290, %291 : vector<2x10xf32>
    %293 = arith.addf %288, %292 : vector<2x10xf32>
    %294 = vector.extract_strided_slice %249 {offsets = [0, 9], sizes = [2, 1], strides = [1, 1]} : vector<2x10xf32> to vector<2x1xf32>
    %295 = vector.broadcast %294 : vector<2x1xf32> to vector<2x10xf32>
    %296 = vector.broadcast %44 : vector<1x10xf32> to vector<2x10xf32>
    %297 = arith.mulf %295, %296 : vector<2x10xf32>
    %298 = arith.addf %293, %297 : vector<2x10xf32>
    %299 = arith.addf %22, %298 : vector<2x10xf32>
    %300 = math.tanh %299 : vector<2x10xf32>
    %301 = vector.extract_strided_slice %300 {offsets = [0, 0], sizes = [2, 1], strides = [1, 1]} : vector<2x10xf32> to vector<2x1xf32>
    %302 = vector.broadcast %301 : vector<2x1xf32> to vector<2x10xf32>
    %303 = vector.broadcast %35 : vector<1x10xf32> to vector<2x10xf32>
    %304 = arith.mulf %302, %303 : vector<2x10xf32>
    %305 = vector.extract_strided_slice %300 {offsets = [0, 1], sizes = [2, 1], strides = [1, 1]} : vector<2x10xf32> to vector<2x1xf32>
    %306 = vector.broadcast %305 : vector<2x1xf32> to vector<2x10xf32>
    %307 = vector.broadcast %36 : vector<1x10xf32> to vector<2x10xf32>
    %308 = arith.mulf %306, %307 : vector<2x10xf32>
    %309 = arith.addf %304, %308 : vector<2x10xf32>
    %310 = vector.extract_strided_slice %300 {offsets = [0, 2], sizes = [2, 1], strides = [1, 1]} : vector<2x10xf32> to vector<2x1xf32>
    %311 = vector.broadcast %310 : vector<2x1xf32> to vector<2x10xf32>
    %312 = vector.broadcast %37 : vector<1x10xf32> to vector<2x10xf32>
    %313 = arith.mulf %311, %312 : vector<2x10xf32>
    %314 = arith.addf %309, %313 : vector<2x10xf32>
    %315 = vector.extract_strided_slice %300 {offsets = [0, 3], sizes = [2, 1], strides = [1, 1]} : vector<2x10xf32> to vector<2x1xf32>
    %316 = vector.broadcast %315 : vector<2x1xf32> to vector<2x10xf32>
    %317 = vector.broadcast %38 : vector<1x10xf32> to vector<2x10xf32>
    %318 = arith.mulf %316, %317 : vector<2x10xf32>
    %319 = arith.addf %314, %318 : vector<2x10xf32>
    %320 = vector.extract_strided_slice %300 {offsets = [0, 4], sizes = [2, 1], strides = [1, 1]} : vector<2x10xf32> to vector<2x1xf32>
    %321 = vector.broadcast %320 : vector<2x1xf32> to vector<2x10xf32>
    %322 = vector.broadcast %39 : vector<1x10xf32> to vector<2x10xf32>
    %323 = arith.mulf %321, %322 : vector<2x10xf32>
    %324 = arith.addf %319, %323 : vector<2x10xf32>
    %325 = vector.extract_strided_slice %300 {offsets = [0, 5], sizes = [2, 1], strides = [1, 1]} : vector<2x10xf32> to vector<2x1xf32>
    %326 = vector.broadcast %325 : vector<2x1xf32> to vector<2x10xf32>
    %327 = vector.broadcast %40 : vector<1x10xf32> to vector<2x10xf32>
    %328 = arith.mulf %326, %327 : vector<2x10xf32>
    %329 = arith.addf %324, %328 : vector<2x10xf32>
    %330 = vector.extract_strided_slice %300 {offsets = [0, 6], sizes = [2, 1], strides = [1, 1]} : vector<2x10xf32> to vector<2x1xf32>
    %331 = vector.broadcast %330 : vector<2x1xf32> to vector<2x10xf32>
    %332 = vector.broadcast %41 : vector<1x10xf32> to vector<2x10xf32>
    %333 = arith.mulf %331, %332 : vector<2x10xf32>
    %334 = arith.addf %329, %333 : vector<2x10xf32>
    %335 = vector.extract_strided_slice %300 {offsets = [0, 7], sizes = [2, 1], strides = [1, 1]} : vector<2x10xf32> to vector<2x1xf32>
    %336 = vector.broadcast %335 : vector<2x1xf32> to vector<2x10xf32>
    %337 = vector.broadcast %42 : vector<1x10xf32> to vector<2x10xf32>
    %338 = arith.mulf %336, %337 : vector<2x10xf32>
    %339 = arith.addf %334, %338 : vector<2x10xf32>
    %340 = vector.extract_strided_slice %300 {offsets = [0, 8], sizes = [2, 1], strides = [1, 1]} : vector<2x10xf32> to vector<2x1xf32>
    %341 = vector.broadcast %340 : vector<2x1xf32> to vector<2x10xf32>
    %342 = vector.broadcast %43 : vector<1x10xf32> to vector<2x10xf32>
    %343 = arith.mulf %341, %342 : vector<2x10xf32>
    %344 = arith.addf %339, %343 : vector<2x10xf32>
    %345 = vector.extract_strided_slice %300 {offsets = [0, 9], sizes = [2, 1], strides = [1, 1]} : vector<2x10xf32> to vector<2x1xf32>
    %346 = vector.broadcast %345 : vector<2x1xf32> to vector<2x10xf32>
    %347 = vector.broadcast %44 : vector<1x10xf32> to vector<2x10xf32>
    %348 = arith.mulf %346, %347 : vector<2x10xf32>
    %349 = arith.addf %344, %348 : vector<2x10xf32>
    %350 = arith.addf %26, %349 : vector<2x10xf32>
    %351 = math.tanh %350 : vector<2x10xf32>
    %352 = vector.extract_strided_slice %351 {offsets = [0, 0], sizes = [2, 1], strides = [1, 1]} : vector<2x10xf32> to vector<2x1xf32>
    %353 = vector.broadcast %352 : vector<2x1xf32> to vector<2x10xf32>
    %354 = vector.broadcast %35 : vector<1x10xf32> to vector<2x10xf32>
    %355 = arith.mulf %353, %354 : vector<2x10xf32>
    %356 = vector.extract_strided_slice %351 {offsets = [0, 1], sizes = [2, 1], strides = [1, 1]} : vector<2x10xf32> to vector<2x1xf32>
    %357 = vector.broadcast %356 : vector<2x1xf32> to vector<2x10xf32>
    %358 = vector.broadcast %36 : vector<1x10xf32> to vector<2x10xf32>
    %359 = arith.mulf %357, %358 : vector<2x10xf32>
    %360 = arith.addf %355, %359 : vector<2x10xf32>
    %361 = vector.extract_strided_slice %351 {offsets = [0, 2], sizes = [2, 1], strides = [1, 1]} : vector<2x10xf32> to vector<2x1xf32>
    %362 = vector.broadcast %361 : vector<2x1xf32> to vector<2x10xf32>
    %363 = vector.broadcast %37 : vector<1x10xf32> to vector<2x10xf32>
    %364 = arith.mulf %362, %363 : vector<2x10xf32>
    %365 = arith.addf %360, %364 : vector<2x10xf32>
    %366 = vector.extract_strided_slice %351 {offsets = [0, 3], sizes = [2, 1], strides = [1, 1]} : vector<2x10xf32> to vector<2x1xf32>
    %367 = vector.broadcast %366 : vector<2x1xf32> to vector<2x10xf32>
    %368 = vector.broadcast %38 : vector<1x10xf32> to vector<2x10xf32>
    %369 = arith.mulf %367, %368 : vector<2x10xf32>
    %370 = arith.addf %365, %369 : vector<2x10xf32>
    %371 = vector.extract_strided_slice %351 {offsets = [0, 4], sizes = [2, 1], strides = [1, 1]} : vector<2x10xf32> to vector<2x1xf32>
    %372 = vector.broadcast %371 : vector<2x1xf32> to vector<2x10xf32>
    %373 = vector.broadcast %39 : vector<1x10xf32> to vector<2x10xf32>
    %374 = arith.mulf %372, %373 : vector<2x10xf32>
    %375 = arith.addf %370, %374 : vector<2x10xf32>
    %376 = vector.extract_strided_slice %351 {offsets = [0, 5], sizes = [2, 1], strides = [1, 1]} : vector<2x10xf32> to vector<2x1xf32>
    %377 = vector.broadcast %376 : vector<2x1xf32> to vector<2x10xf32>
    %378 = vector.broadcast %40 : vector<1x10xf32> to vector<2x10xf32>
    %379 = arith.mulf %377, %378 : vector<2x10xf32>
    %380 = arith.addf %375, %379 : vector<2x10xf32>
    %381 = vector.extract_strided_slice %351 {offsets = [0, 6], sizes = [2, 1], strides = [1, 1]} : vector<2x10xf32> to vector<2x1xf32>
    %382 = vector.broadcast %381 : vector<2x1xf32> to vector<2x10xf32>
    %383 = vector.broadcast %41 : vector<1x10xf32> to vector<2x10xf32>
    %384 = arith.mulf %382, %383 : vector<2x10xf32>
    %385 = arith.addf %380, %384 : vector<2x10xf32>
    %386 = vector.extract_strided_slice %351 {offsets = [0, 7], sizes = [2, 1], strides = [1, 1]} : vector<2x10xf32> to vector<2x1xf32>
    %387 = vector.broadcast %386 : vector<2x1xf32> to vector<2x10xf32>
    %388 = vector.broadcast %42 : vector<1x10xf32> to vector<2x10xf32>
    %389 = arith.mulf %387, %388 : vector<2x10xf32>
    %390 = arith.addf %385, %389 : vector<2x10xf32>
    %391 = vector.extract_strided_slice %351 {offsets = [0, 8], sizes = [2, 1], strides = [1, 1]} : vector<2x10xf32> to vector<2x1xf32>
    %392 = vector.broadcast %391 : vector<2x1xf32> to vector<2x10xf32>
    %393 = vector.broadcast %43 : vector<1x10xf32> to vector<2x10xf32>
    %394 = arith.mulf %392, %393 : vector<2x10xf32>
    %395 = arith.addf %390, %394 : vector<2x10xf32>
    %396 = vector.extract_strided_slice %351 {offsets = [0, 9], sizes = [2, 1], strides = [1, 1]} : vector<2x10xf32> to vector<2x1xf32>
    %397 = vector.broadcast %396 : vector<2x1xf32> to vector<2x10xf32>
    %398 = vector.broadcast %44 : vector<1x10xf32> to vector<2x10xf32>
    %399 = arith.mulf %397, %398 : vector<2x10xf32>
    %400 = arith.addf %395, %399 : vector<2x10xf32>
    %401 = arith.addf %30, %400 : vector<2x10xf32>
    %402 = math.tanh %401 : vector<2x10xf32>
    %403 = vector.extract_strided_slice %402 {offsets = [0, 0], sizes = [2, 1], strides = [1, 1]} : vector<2x10xf32> to vector<2x1xf32>
    %404 = vector.broadcast %403 : vector<2x1xf32> to vector<2x10xf32>
    %405 = vector.broadcast %35 : vector<1x10xf32> to vector<2x10xf32>
    %406 = arith.mulf %404, %405 : vector<2x10xf32>
    %407 = vector.extract_strided_slice %402 {offsets = [0, 1], sizes = [2, 1], strides = [1, 1]} : vector<2x10xf32> to vector<2x1xf32>
    %408 = vector.broadcast %407 : vector<2x1xf32> to vector<2x10xf32>
    %409 = vector.broadcast %36 : vector<1x10xf32> to vector<2x10xf32>
    %410 = arith.mulf %408, %409 : vector<2x10xf32>
    %411 = arith.addf %406, %410 : vector<2x10xf32>
    %412 = vector.extract_strided_slice %402 {offsets = [0, 2], sizes = [2, 1], strides = [1, 1]} : vector<2x10xf32> to vector<2x1xf32>
    %413 = vector.broadcast %412 : vector<2x1xf32> to vector<2x10xf32>
    %414 = vector.broadcast %37 : vector<1x10xf32> to vector<2x10xf32>
    %415 = arith.mulf %413, %414 : vector<2x10xf32>
    %416 = arith.addf %411, %415 : vector<2x10xf32>
    %417 = vector.extract_strided_slice %402 {offsets = [0, 3], sizes = [2, 1], strides = [1, 1]} : vector<2x10xf32> to vector<2x1xf32>
    %418 = vector.broadcast %417 : vector<2x1xf32> to vector<2x10xf32>
    %419 = vector.broadcast %38 : vector<1x10xf32> to vector<2x10xf32>
    %420 = arith.mulf %418, %419 : vector<2x10xf32>
    %421 = arith.addf %416, %420 : vector<2x10xf32>
    %422 = vector.extract_strided_slice %402 {offsets = [0, 4], sizes = [2, 1], strides = [1, 1]} : vector<2x10xf32> to vector<2x1xf32>
    %423 = vector.broadcast %422 : vector<2x1xf32> to vector<2x10xf32>
    %424 = vector.broadcast %39 : vector<1x10xf32> to vector<2x10xf32>
    %425 = arith.mulf %423, %424 : vector<2x10xf32>
    %426 = arith.addf %421, %425 : vector<2x10xf32>
    %427 = vector.extract_strided_slice %402 {offsets = [0, 5], sizes = [2, 1], strides = [1, 1]} : vector<2x10xf32> to vector<2x1xf32>
    %428 = vector.broadcast %427 : vector<2x1xf32> to vector<2x10xf32>
    %429 = vector.broadcast %40 : vector<1x10xf32> to vector<2x10xf32>
    %430 = arith.mulf %428, %429 : vector<2x10xf32>
    %431 = arith.addf %426, %430 : vector<2x10xf32>
    %432 = vector.extract_strided_slice %402 {offsets = [0, 6], sizes = [2, 1], strides = [1, 1]} : vector<2x10xf32> to vector<2x1xf32>
    %433 = vector.broadcast %432 : vector<2x1xf32> to vector<2x10xf32>
    %434 = vector.broadcast %41 : vector<1x10xf32> to vector<2x10xf32>
    %435 = arith.mulf %433, %434 : vector<2x10xf32>
    %436 = arith.addf %431, %435 : vector<2x10xf32>
    %437 = vector.extract_strided_slice %402 {offsets = [0, 7], sizes = [2, 1], strides = [1, 1]} : vector<2x10xf32> to vector<2x1xf32>
    %438 = vector.broadcast %437 : vector<2x1xf32> to vector<2x10xf32>
    %439 = vector.broadcast %42 : vector<1x10xf32> to vector<2x10xf32>
    %440 = arith.mulf %438, %439 : vector<2x10xf32>
    %441 = arith.addf %436, %440 : vector<2x10xf32>
    %442 = vector.extract_strided_slice %402 {offsets = [0, 8], sizes = [2, 1], strides = [1, 1]} : vector<2x10xf32> to vector<2x1xf32>
    %443 = vector.broadcast %442 : vector<2x1xf32> to vector<2x10xf32>
    %444 = vector.broadcast %43 : vector<1x10xf32> to vector<2x10xf32>
    %445 = arith.mulf %443, %444 : vector<2x10xf32>
    %446 = arith.addf %441, %445 : vector<2x10xf32>
    %447 = vector.extract_strided_slice %402 {offsets = [0, 9], sizes = [2, 1], strides = [1, 1]} : vector<2x10xf32> to vector<2x1xf32>
    %448 = vector.broadcast %447 : vector<2x1xf32> to vector<2x10xf32>
    %449 = vector.broadcast %44 : vector<1x10xf32> to vector<2x10xf32>
    %450 = arith.mulf %448, %449 : vector<2x10xf32>
    %451 = arith.addf %446, %450 : vector<2x10xf32>
    %452 = arith.addf %34, %451 : vector<2x10xf32>
    %453 = math.tanh %452 : vector<2x10xf32>
    %c0_22 = arith.constant 0 : index
    %c0_23 = arith.constant 0 : index
    %454 = vector.load %arg2[%c0_22, %c0_23] : memref<2x10xf32, #tpu.memory_space<vmem>>, vector<2x10xf32>
    tpu.vector_store %arg2[%c0_22, %c0_23], %453 {strides = array<i32>} : memref<2x10xf32, #tpu.memory_space<vmem>>, vector<2x10xf32>,
    return
  }
}

</mosaic_0001>

<bundles_post_ra>
// kernel: _rnn_forward_impl.1
= control target key start
LH: loop header
LB: loop body
LE: loop exit
PB: predicated region body
PF: predicated region fallthrough
CT: control target
= control target key end

     0   :  { %vm26_vm0 = vcmask 1043456   ;;  %v103_v3 = vlaneseq  ;;  %v1496_v4 = vmov 0.0|0.0   ;;  %vm1497_vm1 = vmmov 0   ;;  %s1885_s0 = inlined_call_operand.vmem [shape: f32[2,224], index: 0, kind: input, shape index: {}]   ;;  %s1886_s1 = inlined_call_operand.vmem [shape: f32[40,10], index: 1, kind: input, shape index: {}]   ;;  %s1887_s2 = inlined_call_operand.hbm [shape: f32[2,10], index: 2, kind: output, shape index: {}]  }
   0x1   :  { %v13_v0 = vld [vmem:[%s1886_s1] sm:$0xff]  ;;  %v14_v1 = vld [vmem:[%s1886_s1 + $0x8] sm:$0xff]  ;;  %v15_v2 = vld [vmem:[%s1886_s1 + $0x10] sm:$0xff]  ;;  %1306 = vmatprep.subr.bf16.mxu0 %v1496_v4  ;;  %1313 = vmatprep.subr.bf16.mxu1 %v1496_v4  ;;  %v1498_v7 = vmov 0.0   ;;  %v1499_v9 = vmov 1983009808  }
   0x2   :  { %v1544_v5 = vpack.c.bf16 %v14_v1, %v13_v0  ;;  %v16_v6 = vld [vmem:[%s1886_s1 + $0x18] sm:$0xf]  ;;  %1226 = vmatprep.mubr.msk.f32.mxu0 %vm1497_vm1, %v1498_v7  ;;  %1237 = vmatprep.mubr.msk.f32.mxu1 %vm1497_vm1, %v1498_v7  ;;  %v101_v10 = vunpack.c.l.s4 %v1499_v9  ;;  %v104_v11 = vshrl.u32 %v103_v3, 7 }
   0x3   :  { %v1555_v8 = vpack.c.bf16 %v16_v6, %v15_v2 }
   0x4   :  { %1308 = vmatpush3.bf16.msra.mxu0 %v1544_v5  ;;  %1315 = vmatpush3.bf16.msra.mxu1 %v1544_v5 }
   0x5   :  { %7 = vsyncpa [#allocation3], 0  ;;  %1309 = vmatprep.subr.bf16.mxu0 %v1496_v4  ;;  %vm1500_vm2 = vmmov 1   ;;  %1316 = vmatprep.subr.bf16.mxu1 %v1496_v4  ;;  %v102_v13 = vunpack.c.0.s8 %v101_v10  ;;  %v12_v14 = vld [vmem:[%s1885_s0] sm:$0xf]  ;;  %vm22_vm4 = vcmask 228352  }
   0x6   :  { %vm1560_vm3 = vmpackc.low %vm26_vm0, %vm1500_vm2  ;;  %s1501_s19 = smov 100   ;;  %s1502_s0 = smov 44   ;;  %v1504_v17 = vmov 2   ;;  %v1505_v18 = vmov 0   ;;  %v1604_v20 = vld [vmem:[%s1886_s1 + $0x1c] ss:$0 sm:$0xff] }
   0x7   :  { %v105_v15 = vsub.s32 %v102_v13, %v104_v11  ;;  %s1503_s20 = smov 72   ;;  %1387 = vset.pattern.permute.xlu0 %v1504_v17  ;;  %1385 = vset.pattern.permute.xlu1 %v1505_v18  ;;  %v1609_v21 = vld [vmem:[%s1886_s1 + $0x1d] ss:$0 sm:$0xff]  ;;  %v644_v22 = vmul.f32 0.0, %v1604_v20  ;;  %v1616_v24 = vld [vmem:[%s1886_s1 + $0x1e] ss:$0 sm:$0xff] }
   0x8   :  { %1312 = vmatpush3.bf16.msk.msra.mxu0 %vm1560_vm3, %v1555_v8  ;;  %1319 = vmatpush3.bf16.msk.msra.mxu1 %vm1560_vm3, %v1555_v8  ;;  %v649_v23 = vmul.f32 0.0, %v1609_v21  ;;  %v655_v26 = vmul.f32 0.0, %v1616_v24  ;;  %v1622_v27 = vld [vmem:[%s1886_s1 + $0x1f] ss:$0 sm:$0xff]  ;;  %v1628_v30 = vld [vmem:[%s1886_s1 + $0x20] ss:$0 sm:$0xff] }
   0x9   :  { %1327 = vmatprep.subr.bf16.mxu1 %v1496_v4  ;;  %1320 = vmatprep.subr.bf16.mxu0 %v1496_v4  ;;  %v1576_v16 = vrot.slane %v12_v14, %v105_v15  ;;  %v661_v29 = vmul.f32 0.0, %v1622_v27  ;;  %v667_v32 = vmul.f32 0.0, %v1628_v30  ;;  %v1634_v33 = vld [vmem:[%s1886_s1 + $0x21] ss:$0 sm:$0xff]  ;;  %v1640_v36 = vld [vmem:[%s1886_s1 + $0x22] ss:$0 sm:$0xff] }
   0xa   :  { %v650_v25 = vadd.f32 %v649_v23, %v644_v22  ;;  %v673_v35 = vmul.f32 0.0, %v1634_v33  ;;  %v679_v38 = vmul.f32 0.0, %v1640_v36  ;;  %v1646_v39 = vld [vmem:[%s1886_s1 + $0x23] ss:$0 sm:$0xff]  ;;  %v1652_v42 = vld [vmem:[%s1886_s1 + $0x24] ss:$0 sm:$0xff] }
   0xb   :  { %1227 = vmatmul.mubr.msk.f32.vlgmr.msra.gmra.mrb[0].mxu0 %vm22_vm4, %v12_v14  ;;  %107 = vrot.lane.b32.xlu0 %v1576_v16, %s1501_s19  ;;  %v685_v41 = vmul.f32 0.0, %v1646_v39  ;;  %v691_v44 = vmul.f32 0.0, %v1652_v42  ;;  %v1658_v45 = vld [vmem:[%s1886_s1 + $0x25] ss:$0 sm:$0xff]  ;;  %v1674_v50 = vld [vmem:[%s1886_s1 + $0x26] ss:$0 sm:$0xff]  ;;  %v1697_v1 = vcombine.high %v1576_v16, %v1576_v16 }
   0xc   :  { %1322 = vmatpush3.bf16.msra.mxu0 %v1544_v5  ;;  %1248 = vmatprep.mubr.msk.f32.mxu0 %vm1497_vm1, %v1498_v7  ;;  %v656_v28 = vadd.f32 %v655_v26, %v650_v25  ;;  %v697_v49 = vmul.f32 0.0, %v1658_v45  ;;  %v1506_v57 = vmov 5   ;;  %v1507_v58 = vmov 1   ;;  %s1514_s1 = smov 16   ;;  %s1515_s15 = smov 116  }
   0xd   :  { %1323 = vmatprep.subr.bf16.mxu0 %v1496_v4  ;;  %255 = vrot.lane.b32.xlu1 %v1576_v16, %s1502_s0  ;;  %v1508_v59 = vmov 7   ;;  %v1509_v60 = vmov 3   ;;  %v1510_v61 = vmov 4   ;;  %v1511_v62 = vmov 6   ;;  %s1516_s16 = smov 88   ;;  %s1517_s17 = smov 60  }
   0xe   :  { %v662_v31 = vadd.f32 %v661_v29, %v656_v28  ;;  %v1512_v63 = vmov 8   ;;  %v1513_v0 = vmov 9   ;;  %vm334_vm5 = vcmask 130048   ;;  %s1518_s18 = smov [#allocation2]  }
   0xf   :  { %181 = vrot.lane.b32.xlu0 %v1576_v16, %s1503_s20  ;;  %s1143_s19 = sshll.u32 %s1518_s18, 4  ;;  %vm1135_vm6 = vcmask 74752   ;;  %s1144_s19 = int_to_ptr.vmem [resolvable:$true] %s1143_s19 }
  0x10   :  { %1326 = vmatpush3.bf16.msk.msra.mxu0 %vm1560_vm3, %v1555_v8  ;;  %v668_v34 = vadd.f32 %v667_v32, %v662_v31  ;;  %s1472_s0 = scalar_lea.vmem %s1144_s19, 32  ;;  %p1477_p1 = scmp.lt.s32.totalorder %s1144_s19, %s1144_s19 }
  0x11   :  { %1334 = vmatprep.subr.bf16.mxu0 %v1496_v4  ;;  %p1473_p0 = scmp.ne.s32.totalorder %s1144_s19, %s1472_s0  ;;  %p1478_p2 = scmp.lt.s32.totalorder %s1472_s0, %s1472_s0 }
  0x12   :  { %v674_v37 = vadd.f32 %v673_v35, %v668_v34 }
  0x13   :  { %p1479_p3 = por %p1478_p2, %p1477_p1 }
  0x14   :  { %v680_v40 = vadd.f32 %v679_v38, %v674_v37 }
  0x15   :  { %p1480_p4 = pnand %p1479_p3, %p1473_p0 }
  0x16   :  { %v686_v43 = vadd.f32 %v685_v41, %v680_v40 }
  0x18   :  { %v692_v48 = vadd.f32 %v691_v44, %v686_v43 }
  0x1a   :  { %v698_v51 = vadd.f32 %v697_v49, %v692_v48 }
  0x7d   :  { %v108_v19 = vpop.permute.xlu0 %107 }
  0x7e   :  { %1238 = vmatmul.mubr.msk.f32.vlgmr.msra.gmra.mrb[0].mxu1 %vm22_vm4, %v108_v19 }
  0x7f   :  { %1329 = vmatpush3.bf16.msra.mxu1 %v1544_v5  ;;  %1259 = vmatprep.mubr.msk.f32.mxu1 %vm1497_vm1, %v1498_v7  ;;  %v256_v46 = vpop.permute.xlu1 %255 }
  0x80   :  { %1330 = vmatprep.subr.bf16.mxu1 %v1496_v4 }
  0x81   :  { %v182_v47 = vpop.permute.xlu0 %181 }
  0x82   :  { %1249 = vmatmul.mubr.msk.f32.vlgmr.msra.gmra.mrb[2].mxu0 %vm22_vm4, %v182_v47 }
  0x83   :  { %1333 = vmatpush3.bf16.msk.msra.mxu1 %vm1560_vm3, %v1555_v8  ;;  %1336 = vmatpush3.bf16.msra.mxu0 %v1544_v5 }
  0x84   :  { %1341 = vmatprep.subr.bf16.mxu1 %v1496_v4  ;;  %1270 = vmatprep.mubr.msk.f32.mxu0 %vm1497_vm1, %v1498_v7 }
  0x85   :  { %1337 = vmatprep.subr.bf16.mxu0 %v1496_v4 }
  0x86   :  { %1260 = vmatmul.mubr.msk.f32.vlgmr.msra.gmra.mrb[2].mxu1 %vm22_vm4, %v256_v46 }
  0x87   :  { %1343 = vmatpush3.bf16.msra.mxu1 %v1544_v5  ;;  %1281 = vmatprep.mubr.msk.f32.mxu1 %vm1497_vm1, %v1498_v7 }
  0x88   :  { %1344 = vmatprep.subr.bf16.mxu1 %v1496_v4  ;;  %1340 = vmatpush3.bf16.msk.msra.mxu0 %vm1560_vm3, %v1555_v8 }
  0x89   :  { %1348 = vmatprep.subr.bf16.mxu0 %v1496_v4 }
  0x8b   :  { %1347 = vmatpush3.bf16.msk.msra.mxu1 %vm1560_vm3, %v1555_v8 }
  0x8c   :  { %1355 = vmatprep.subr.bf16.mxu1 %v1496_v4 }
  0xde   :  { %v96_v52 = vpop.f32.mrb[0].mxu0 }
  0xdf   :  { %v97_v53 = vadd.f32 %v1674_v50, %v96_v52  ;;  %v1228_v54 = vpop.f32.mrb[1].mxu0 }
  0xe1   :  { %v699_v55 = vadd.f32 %v698_v51, %v97_v53 }
  0xe3   :  { %1456 = vtanh.f32 %v699_v55 }
  0xed   :  { %v1457_v56 = vpop.eup %1456 }
  0xee   :  { %714 = vperm.xlu0 %1387, %v1457_v56   ;;  %703 = vperm.xlu1 %1385, %v1457_v56  }
  0xf2   :  { %1390 = vset.pattern.permute.xlu0 %v1506_v57  ;;  %1386 = vset.pattern.permute.xlu1 %v1507_v58 }
  0xf3   :  { %732 = vperm.xlu0 %1390, %v1457_v56   ;;  %708 = vperm.xlu1 %1386, %v1457_v56  }
  0xf7   :  { %1392 = vset.pattern.permute.xlu0 %v1508_v59  ;;  %1388 = vset.pattern.permute.xlu1 %v1509_v60 }
  0xf8   :  { %744 = vperm.xlu0 %1392, %v1457_v56   ;;  %720 = vperm.xlu1 %1388, %v1457_v56  }
  0xfc   :  { %1389 = vset.pattern.permute.xlu1 %v1510_v61  ;;  %1395 = vset.pattern.permute.xlu0 %v1505_v18 }
  0xfd   :  { %726 = vperm.xlu1 %1389, %v1457_v56   ;;  %332 = vrot.lane.b32.xlu0 %v1697_v1, %s1514_s1 }
 0x101   :  { %1391 = vset.pattern.permute.xlu1 %v1511_v62 }
 0x102   :  { %738 = vperm.xlu1 %1391, %v1457_v56  }
 0x106   :  { %1393 = vset.pattern.permute.xlu1 %v1512_v63 }
 0x107   :  { %750 = vperm.xlu1 %1393, %v1457_v56  }
 0x10b   :  { %1394 = vset.pattern.permute.xlu1 %v1513_v0 }
 0x10c   :  { %756 = vperm.xlu1 %1394, %v1457_v56  }
 0x110   :  { %1396 = vset.pattern.permute.xlu1 %v1507_v58 }
 0x111   :  { %330 = vrot.lane.b32.xlu1 %v1576_v16, %s1514_s1 }
 0x151   :  { %v177_v2 = vpop.f32.mrb[0].mxu1 }
 0x152   :  { %v1239_v3 = vpop.f32.mrb[1].mxu1  ;;  %v178_v49 = vadd.f32 %v1674_v50, %v177_v2 }
 0x159   :  { %v1726_v2 = vpop.f32.mrb[2].mxu1 }
 0x15a   :  { %v1261_v3 = vpop.f32.mrb[3].mxu1 }
 0x16d   :  { %v704_v6 = vpop.permute.xlu1 %703  ;;  %v715_v13 = vpop.permute.xlu0 %714 }
 0x16e   :  { %v706_v10 = vmul.f32 %v1604_v20, %v704_v6  ;;  %v717_v15 = vmul.f32 %v1616_v24, %v715_v13  ;;  %v251_v6 = vpop.f32.mrb[2].mxu0 }
 0x172   :  { %v709_v9 = vpop.permute.xlu1 %708  ;;  %v733_v25 = vpop.permute.xlu0 %732 }
 0x173   :  { %v711_v11 = vmul.f32 %v1609_v21, %v709_v9  ;;  %v735_v29 = vmul.f32 %v1634_v33, %v733_v25  ;;  %v1250_v9 = vpop.f32.mrb[3].mxu0 }
 0x175   :  { %v712_v14 = vadd.f32 %v711_v11, %v706_v10 }
 0x177   :  { %v721_v19 = vpop.permute.xlu1 %720  ;;  %v718_v22 = vadd.f32 %v717_v15, %v712_v14  ;;  %v745_v37 = vpop.permute.xlu0 %744 }
 0x178   :  { %v723_v23 = vmul.f32 %v1622_v27, %v721_v19  ;;  %v747_v40 = vmul.f32 %v1646_v39, %v745_v37 }
 0x17a   :  { %v724_v26 = vadd.f32 %v723_v23, %v718_v22 }
 0x17b   :  { %v333_v51 = vpop.permute.xlu0 %332 }
 0x17c   :  { %v727_v16 = vpop.permute.xlu1 %726 }
 0x17d   :  { %v729_v28 = vmul.f32 %v1628_v30, %v727_v16 }
 0x17f   :  { %v730_v31 = vadd.f32 %v729_v28, %v724_v26 }
 0x181   :  { %v736_v32 = vadd.f32 %v735_v29, %v730_v31  ;;  %v739_v34 = vpop.permute.xlu1 %738 }
 0x182   :  { %v741_v35 = vmul.f32 %v1640_v36, %v739_v34 }
 0x184   :  { %v742_v38 = vadd.f32 %v741_v35, %v736_v32 }
 0x186   :  { %v751_v41 = vpop.permute.xlu1 %750  ;;  %v748_v43 = vadd.f32 %v747_v40, %v742_v38 }
 0x187   :  { %v753_v44 = vmul.f32 %v1652_v42, %v751_v41 }
 0x189   :  { %v754_v47 = vadd.f32 %v753_v44, %v748_v43 }
 0x18b   :  { %v757_v46 = vpop.permute.xlu1 %756 }
 0x18c   :  { %v759_v48 = vmul.f32 %v1658_v45, %v757_v46 }
 0x18e   :  { %v760_v52 = vadd.f32 %v759_v48, %v754_v47 }
 0x18f   :  { %v331_v53 = vpop.permute.xlu1 %330 }
 0x190   :  { %v761_v54 = vadd.f32 %v760_v52, %v178_v49  ;;  %v335_v55 = vsel %vm334_vm5, %v331_v53, %v333_v51  ;;  %v252_v52 = vadd.f32 %v1674_v50, %v251_v6 }
 0x191   :  { %1271 = vmatmul.mubr.msk.f32.vlgmr.msra.gmra.mrb[4].mxu0 %vm22_vm4, %v335_v55 }
 0x192   :  { %1458 = vtanh.f32 %v761_v54  ;;  %1350 = vmatpush3.bf16.msra.mxu0 %v1544_v5  ;;  %1292 = vmatprep.mubr.msk.f32.mxu0 %vm1497_vm1, %v1498_v7 }
 0x193   :  { %1351 = vmatprep.subr.bf16.mxu0 %v1496_v4 }
 0x196   :  { %1354 = vmatpush3.bf16.msk.msra.mxu0 %vm1560_vm3, %v1555_v8 }
 0x19c   :  { %v1459_v56 = vpop.eup %1458 }
 0x19d   :  { %770 = vperm.xlu1 %1396, %v1459_v56   ;;  %765 = vperm.xlu0 %1395, %v1459_v56  }
 0x1a1   :  { %1397 = vset.pattern.permute.xlu1 %v1504_v17  ;;  %1398 = vset.pattern.permute.xlu0 %v1509_v60 }
 0x1a2   :  { %776 = vperm.xlu1 %1397, %v1459_v56   ;;  %782 = vperm.xlu0 %1398, %v1459_v56  }
 0x1a6   :  { %1399 = vset.pattern.permute.xlu1 %v1510_v61  ;;  %1401 = vset.pattern.permute.xlu0 %v1511_v62 }
 0x1a7   :  { %788 = vperm.xlu1 %1399, %v1459_v56   ;;  %800 = vperm.xlu0 %1401, %v1459_v56  }
 0x1ab   :  { %1400 = vset.pattern.permute.xlu1 %v1506_v57  ;;  %1404 = vset.pattern.permute.xlu0 %v1513_v0 }
 0x1ac   :  { %794 = vperm.xlu1 %1400, %v1459_v56   ;;  %818 = vperm.xlu0 %1404, %v1459_v56  }
 0x1b0   :  { %1402 = vset.pattern.permute.xlu1 %v1508_v59  ;;  %1407 = vset.pattern.permute.xlu0 %v1504_v17 }
 0x1b1   :  { %806 = vperm.xlu1 %1402, %v1459_v56  }
 0x1b5   :  { %1403 = vset.pattern.permute.xlu1 %v1512_v63 }
 0x1b6   :  { %812 = vperm.xlu1 %1403, %v1459_v56  }
 0x1ba   :  { %1405 = vset.pattern.permute.xlu1 %v1505_v18 }
 0x1bb   :  { %408 = vrot.lane.b32.xlu1 %v1697_v1, %s1515_s15 }
 0x21c   :  { %v766_v10 = vpop.permute.xlu0 %765  ;;  %v771_v11 = vpop.permute.xlu1 %770 }
 0x21d   :  { %v768_v13 = vmul.f32 %v1604_v20, %v766_v10  ;;  %v773_v14 = vmul.f32 %v1609_v21, %v771_v11 }
 0x21f   :  { %v774_v19 = vadd.f32 %v773_v14, %v768_v13 }
 0x221   :  { %v777_v15 = vpop.permute.xlu1 %776  ;;  %v783_v23 = vpop.permute.xlu0 %782 }
 0x222   :  { %v779_v22 = vmul.f32 %v1616_v24, %v777_v15  ;;  %v785_v16 = vmul.f32 %v1622_v27, %v783_v23 }
 0x224   :  { %v780_v25 = vadd.f32 %v779_v22, %v774_v19 }
 0x226   :  { %v789_v26 = vpop.permute.xlu1 %788  ;;  %v786_v28 = vadd.f32 %v785_v16, %v780_v25  ;;  %v801_v35 = vpop.permute.xlu0 %800 }
 0x227   :  { %v791_v29 = vmul.f32 %v1628_v30, %v789_v26  ;;  %v803_v38 = vmul.f32 %v1640_v36, %v801_v35 }
 0x229   :  { %v792_v32 = vadd.f32 %v791_v29, %v786_v28 }
 0x22b   :  { %v795_v31 = vpop.permute.xlu1 %794  ;;  %v819_v44 = vpop.permute.xlu0 %818 }
 0x22c   :  { %v797_v34 = vmul.f32 %v1634_v33, %v795_v31  ;;  %v821_v49 = vmul.f32 %v1658_v45, %v819_v44 }
 0x22e   :  { %v798_v37 = vadd.f32 %v797_v34, %v792_v32 }
 0x230   :  { %v807_v40 = vpop.permute.xlu1 %806  ;;  %v804_v41 = vadd.f32 %v803_v38, %v798_v37 }
 0x231   :  { %v809_v43 = vmul.f32 %v1646_v39, %v807_v40 }
 0x233   :  { %v810_v47 = vadd.f32 %v809_v43, %v804_v41 }
 0x235   :  { %v813_v46 = vpop.permute.xlu1 %812 }
 0x236   :  { %v815_v48 = vmul.f32 %v1652_v42, %v813_v46  ;;  %v326_v46 = vadd.f32 %v1674_v50, %v1726_v2 }
 0x238   :  { %v816_v51 = vadd.f32 %v815_v48, %v810_v47 }
 0x239   :  { %v409_v53 = vpop.permute.xlu1 %408 }
 0x23a   :  { %v822_v54 = vadd.f32 %v821_v49, %v816_v51  ;;  %1282 = vmatmul.mubr.msk.f32.vlgmr.msra.gmra.mrb[4].mxu1 %vm22_vm4, %v409_v53 }
 0x23b   :  { %1357 = vmatpush3.bf16.msra.mxu1 %v1544_v5  ;;  %1303 = vmatprep.mubr.msk.f32.mxu1 %vm1497_vm1, %v1498_v7 }
 0x23c   :  { %v823_v55 = vadd.f32 %v822_v54, %v252_v52  ;;  %1358 = vmatprep.subr.bf16.mxu1 %v1496_v4 }
 0x23e   :  { %1460 = vtanh.f32 %v823_v55 }
 0x23f   :  { %1361 = vmatpush3.bf16.msk.msra.mxu1 %vm1560_vm3, %v1555_v8 }
 0x248   :  { %v1461_v56 = vpop.eup %1460 }
 0x249   :  { %838 = vperm.xlu0 %1407, %v1461_v56   ;;  %827 = vperm.xlu1 %1405, %v1461_v56  }
 0x24d   :  { %1410 = vset.pattern.permute.xlu0 %v1506_v57  ;;  %1406 = vset.pattern.permute.xlu1 %v1507_v58 }
 0x24e   :  { %856 = vperm.xlu0 %1410, %v1461_v56   ;;  %832 = vperm.xlu1 %1406, %v1461_v56  }
 0x252   :  { %1412 = vset.pattern.permute.xlu0 %v1508_v59  ;;  %1408 = vset.pattern.permute.xlu1 %v1509_v60 }
 0x253   :  { %868 = vperm.xlu0 %1412, %v1461_v56   ;;  %844 = vperm.xlu1 %1408, %v1461_v56  }
 0x257   :  { %1409 = vset.pattern.permute.xlu1 %v1510_v61  ;;  %1415 = vset.pattern.permute.xlu0 %v1505_v18 }
 0x258   :  { %850 = vperm.xlu1 %1409, %v1461_v56   ;;  %482 = vrot.lane.b32.xlu0 %v1697_v1, %s1516_s16 }
 0x25c   :  { %1411 = vset.pattern.permute.xlu1 %v1511_v62 }
 0x25d   :  { %862 = vperm.xlu1 %1411, %v1461_v56  }
 0x261   :  { %1413 = vset.pattern.permute.xlu1 %v1512_v63 }
 0x262   :  { %874 = vperm.xlu1 %1413, %v1461_v56  }
 0x264   :  { %v1760_v4 = vpop.f32.mrb[4].mxu0 }
 0x265   :  { %v1272_v5 = vpop.f32.mrb[5].mxu0 }
 0x266   :  { %1414 = vset.pattern.permute.xlu1 %v1513_v0 }
 0x267   :  { %880 = vperm.xlu1 %1414, %v1461_v56  }
 0x26b   :  { %1416 = vset.pattern.permute.xlu1 %v1507_v58 }
 0x2c8   :  { %v828_v7 = vpop.permute.xlu1 %827  ;;  %v839_v6 = vpop.permute.xlu0 %838 }
 0x2c9   :  { %v830_v12 = vmul.f32 %v1604_v20, %v828_v7  ;;  %v841_v10 = vmul.f32 %v1616_v24, %v839_v6 }
 0x2cd   :  { %v833_v8 = vpop.permute.xlu1 %832  ;;  %v857_v15 = vpop.permute.xlu0 %856 }
 0x2ce   :  { %v835_v3 = vmul.f32 %v1609_v21, %v833_v8  ;;  %v859_v25 = vmul.f32 %v1634_v33, %v857_v15 }
 0x2d0   :  { %v836_v9 = vadd.f32 %v835_v3, %v830_v12 }
 0x2d2   :  { %v845_v11 = vpop.permute.xlu1 %844  ;;  %v842_v13 = vadd.f32 %v841_v10, %v836_v9  ;;  %v869_v26 = vpop.permute.xlu0 %868 }
 0x2d3   :  { %v847_v14 = vmul.f32 %v1622_v27, %v845_v11  ;;  %v871_v35 = vmul.f32 %v1646_v39, %v869_v26 }
 0x2d5   :  { %v848_v22 = vadd.f32 %v847_v14, %v842_v13 }
 0x2d6   :  { %v483_v34 = vpop.permute.xlu0 %482 }
 0x2d7   :  { %v851_v19 = vpop.permute.xlu1 %850  ;;  %1293 = vmatmul.mubr.msk.f32.vlgmr.msra.gmra.mrb[6].mxu0 %vm22_vm4, %v483_v34 }
 0x2d8   :  { %v853_v23 = vmul.f32 %v1628_v30, %v851_v19 }
 0x2da   :  { %v854_v16 = vadd.f32 %v853_v23, %v848_v22 }
 0x2dc   :  { %v860_v28 = vadd.f32 %v859_v25, %v854_v16  ;;  %v863_v29 = vpop.permute.xlu1 %862 }
 0x2dd   :  { %v865_v31 = vmul.f32 %v1640_v36, %v863_v29 }
 0x2df   :  { %v866_v32 = vadd.f32 %v865_v31, %v860_v28 }
 0x2e1   :  { %v875_v37 = vpop.permute.xlu1 %874  ;;  %v872_v38 = vadd.f32 %v871_v35, %v866_v32  ;;  %v405_v35 = vadd.f32 %v1674_v50, %v1760_v4 }
 0x2e2   :  { %v877_v40 = vmul.f32 %v1652_v42, %v875_v37 }
 0x2e4   :  { %v878_v43 = vadd.f32 %v877_v40, %v872_v38 }
 0x2e6   :  { %v881_v41 = vpop.permute.xlu1 %880 }
 0x2e7   :  { %v883_v44 = vmul.f32 %v1658_v45, %v881_v41 }
 0x2e9   :  { %v884_v47 = vadd.f32 %v883_v44, %v878_v43 }
 0x2eb   :  { %v885_v48 = vadd.f32 %v884_v47, %v326_v46 }
 0x2ed   :  { %1462 = vtanh.f32 %v885_v48 }
 0x2f7   :  { %v1463_v49 = vpop.eup %1462 }
 0x2f8   :  { %894 = vperm.xlu1 %1416, %v1463_v49   ;;  %889 = vperm.xlu0 %1415, %v1463_v49  }
 0x2fc   :  { %1417 = vset.pattern.permute.xlu1 %v1504_v17  ;;  %1418 = vset.pattern.permute.xlu0 %v1509_v60 }
 0x2fd   :  { %900 = vperm.xlu1 %1417, %v1463_v49   ;;  %906 = vperm.xlu0 %1418, %v1463_v49  }
 0x301   :  { %1419 = vset.pattern.permute.xlu1 %v1510_v61  ;;  %1422 = vset.pattern.permute.xlu0 %v1508_v59 }
 0x302   :  { %912 = vperm.xlu1 %1419, %v1463_v49   ;;  %930 = vperm.xlu0 %1422, %v1463_v49  }
 0x306   :  { %1420 = vset.pattern.permute.xlu1 %v1506_v57  ;;  %1425 = vset.pattern.permute.xlu0 %v1505_v18 }
 0x307   :  { %918 = vperm.xlu1 %1420, %v1463_v49   ;;  %556 = vrot.lane.b32.xlu0 %v1697_v1, %s1517_s17 }
 0x30b   :  { %1421 = vset.pattern.permute.xlu1 %v1511_v62 }
 0x30c   :  { %924 = vperm.xlu1 %1421, %v1463_v49  }
 0x30d   :  { %v1785_v2 = vpop.f32.mrb[4].mxu1 }
 0x30e   :  { %v1283_v51 = vpop.f32.mrb[5].mxu1 }
 0x310   :  { %1423 = vset.pattern.permute.xlu1 %v1512_v63 }
 0x311   :  { %936 = vperm.xlu1 %1423, %v1463_v49  }
 0x315   :  { %1424 = vset.pattern.permute.xlu1 %v1513_v0 }
 0x316   :  { %942 = vperm.xlu1 %1424, %v1463_v49  }
 0x31a   :  { %1426 = vset.pattern.permute.xlu1 %v1507_v58 }
 0x377   :  { %v895_v52 = vpop.permute.xlu1 %894  ;;  %v890_v53 = vpop.permute.xlu0 %889 }
 0x378   :  { %v897_v54 = vmul.f32 %v1609_v21, %v895_v52  ;;  %v892_v55 = vmul.f32 %v1604_v20, %v890_v53 }
 0x37a   :  { %v898_v7 = vadd.f32 %v897_v54, %v892_v55 }
 0x37c   :  { %v901_v56 = vpop.permute.xlu1 %900  ;;  %v907_v8 = vpop.permute.xlu0 %906 }
 0x37d   :  { %v903_v5 = vmul.f32 %v1616_v24, %v901_v56  ;;  %v909_v6 = vmul.f32 %v1622_v27, %v907_v8 }
 0x37f   :  { %v904_v3 = vadd.f32 %v903_v5, %v898_v7 }
 0x381   :  { %v913_v12 = vpop.permute.xlu1 %912  ;;  %v910_v9 = vadd.f32 %v909_v6, %v904_v3  ;;  %v931_v14 = vpop.permute.xlu0 %930 }
 0x382   :  { %v915_v10 = vmul.f32 %v1628_v30, %v913_v12  ;;  %v933_v16 = vmul.f32 %v1646_v39, %v931_v14 }
 0x384   :  { %v916_v13 = vadd.f32 %v915_v10, %v910_v9 }
 0x385   :  { %v557_v25 = vpop.permute.xlu0 %556 }
 0x386   :  { %v919_v11 = vpop.permute.xlu1 %918  ;;  %1304 = vmatmul.mubr.msk.f32.vlgmr.msra.gmra.mrb[6].mxu1 %vm22_vm4, %v557_v25  ;;  %v479_v25 = vadd.f32 %v1674_v50, %v1785_v2 }
 0x387   :  { %v921_v1 = vmul.f32 %v1634_v33, %v919_v11 }
 0x389   :  { %v922_v19 = vadd.f32 %v921_v1, %v916_v13 }
 0x38b   :  { %v925_v15 = vpop.permute.xlu1 %924 }
 0x38c   :  { %v927_v22 = vmul.f32 %v1640_v36, %v925_v15 }
 0x38e   :  { %v928_v23 = vadd.f32 %v927_v22, %v922_v19 }
 0x390   :  { %v937_v26 = vpop.permute.xlu1 %936  ;;  %v934_v28 = vadd.f32 %v933_v16, %v928_v23 }
 0x391   :  { %v939_v29 = vmul.f32 %v1652_v42, %v937_v26 }
 0x393   :  { %v940_v32 = vadd.f32 %v939_v29, %v934_v28 }
 0x395   :  { %v943_v31 = vpop.permute.xlu1 %942 }
 0x396   :  { %v945_v34 = vmul.f32 %v1658_v45, %v943_v31 }
 0x398   :  { %v946_v37 = vadd.f32 %v945_v34, %v940_v32 }
 0x39a   :  { %v947_v38 = vadd.f32 %v946_v37, %v405_v35 }
 0x39c   :  { %1464 = vtanh.f32 %v947_v38 }
 0x3a6   :  { %v1465_v40 = vpop.eup %1464 }
 0x3a7   :  { %956 = vperm.xlu1 %1426, %v1465_v40   ;;  %951 = vperm.xlu0 %1425, %v1465_v40  }
 0x3aa   :  { %v1813_v4 = vpop.f32.mrb[6].mxu0 }
 0x3ab   :  { %1427 = vset.pattern.permute.xlu1 %v1504_v17  ;;  %1428 = vset.pattern.permute.xlu0 %v1509_v60  ;;  %v1294_v41 = vpop.f32.mrb[7].mxu0 }
 0x3ac   :  { %962 = vperm.xlu1 %1427, %v1465_v40   ;;  %968 = vperm.xlu0 %1428, %v1465_v40  }
 0x3b0   :  { %1429 = vset.pattern.permute.xlu1 %v1510_v61  ;;  %1432 = vset.pattern.permute.xlu0 %v1508_v59 }
 0x3b1   :  { %974 = vperm.xlu1 %1429, %v1465_v40   ;;  %992 = vperm.xlu0 %1432, %v1465_v40  }
 0x3b5   :  { %1430 = vset.pattern.permute.xlu1 %v1506_v57  ;;  %1435 = vset.pattern.permute.xlu0 %v1505_v18 }
 0x3b6   :  { %980 = vperm.xlu1 %1430, %v1465_v40  }
 0x3ba   :  { %1431 = vset.pattern.permute.xlu1 %v1511_v62 }
 0x3bb   :  { %986 = vperm.xlu1 %1431, %v1465_v40  }
 0x3bf   :  { %1433 = vset.pattern.permute.xlu1 %v1512_v63 }
 0x3c0   :  { %998 = vperm.xlu1 %1433, %v1465_v40  }
 0x3c4   :  { %1434 = vset.pattern.permute.xlu1 %v1513_v0 }
 0x3c5   :  { %1004 = vperm.xlu1 %1434, %v1465_v40  }
 0x3c9   :  { %1436 = vset.pattern.permute.xlu1 %v1507_v58 }
 0x426   :  { %v957_v43 = vpop.permute.xlu1 %956  ;;  %v952_v44 = vpop.permute.xlu0 %951 }
 0x427   :  { %v959_v46 = vmul.f32 %v1609_v21, %v957_v43  ;;  %v954_v47 = vmul.f32 %v1604_v20, %v952_v44 }
 0x429   :  { %v960_v51 = vadd.f32 %v959_v46, %v954_v47 }
 0x42b   :  { %v963_v48 = vpop.permute.xlu1 %962  ;;  %v969_v52 = vpop.permute.xlu0 %968 }
 0x42c   :  { %v965_v49 = vmul.f32 %v1616_v24, %v963_v48  ;;  %v971_v55 = vmul.f32 %v1622_v27, %v969_v52 }
 0x42e   :  { %v966_v54 = vadd.f32 %v965_v49, %v960_v51 }
 0x430   :  { %v975_v53 = vpop.permute.xlu1 %974  ;;  %v972_v56 = vadd.f32 %v971_v55, %v966_v54  ;;  %v993_v10 = vpop.permute.xlu0 %992 }
 0x431   :  { %v977_v5 = vmul.f32 %v1628_v30, %v975_v53  ;;  %v995_v1 = vmul.f32 %v1646_v39, %v993_v10 }
 0x433   :  { %v978_v12 = vadd.f32 %v977_v5, %v972_v56 }
 0x435   :  { %v981_v7 = vpop.permute.xlu1 %980 }
 0x436   :  { %v983_v8 = vmul.f32 %v1634_v33, %v981_v7 }
 0x438   :  { %v984_v6 = vadd.f32 %v983_v8, %v978_v12 }
 0x43a   :  { %v987_v3 = vpop.permute.xlu1 %986 }
 0x43b   :  { %v989_v9 = vmul.f32 %v1640_v36, %v987_v3 }
 0x43d   :  { %v990_v11 = vadd.f32 %v989_v9, %v984_v6  ;;  %v553_v9 = vadd.f32 %v1674_v50, %v1813_v4 }
 0x43f   :  { %v999_v13 = vpop.permute.xlu1 %998  ;;  %v996_v14 = vadd.f32 %v995_v1, %v990_v11 }
 0x440   :  { %v1001_v15 = vmul.f32 %v1652_v42, %v999_v13 }
 0x442   :  { %v1002_v22 = vadd.f32 %v1001_v15, %v996_v14 }
 0x444   :  { %v1005_v19 = vpop.permute.xlu1 %1004 }
 0x445   :  { %v1007_v23 = vmul.f32 %v1658_v45, %v1005_v19 }
 0x447   :  { %v1008_v16 = vadd.f32 %v1007_v23, %v1002_v22 }
 0x449   :  { %v1009_v26 = vadd.f32 %v1008_v16, %v479_v25 }
 0x44b   :  { %1466 = vtanh.f32 %v1009_v26 }
 0x455   :  { %v1467_v28 = vpop.eup %1466 }
 0x456   :  { %1018 = vperm.xlu1 %1436, %v1467_v28   ;;  %1013 = vperm.xlu0 %1435, %v1467_v28  }
 0x459   :  { %v1838_v2 = vpop.f32.mrb[6].mxu1 }
 0x45a   :  { %1437 = vset.pattern.permute.xlu1 %v1504_v17  ;;  %1438 = vset.pattern.permute.xlu0 %v1509_v60  ;;  %v1305_v29 = vpop.f32.mrb[7].mxu1 }
 0x45b   :  { %1024 = vperm.xlu1 %1437, %v1467_v28   ;;  %1030 = vperm.xlu0 %1438, %v1467_v28  }
 0x45f   :  { %1439 = vset.pattern.permute.xlu1 %v1510_v61  ;;  %1441 = vset.pattern.permute.xlu0 %v1511_v62 }
 0x460   :  { %1036 = vperm.xlu1 %1439, %v1467_v28   ;;  %1048 = vperm.xlu0 %1441, %v1467_v28  }
 0x464   :  { %1440 = vset.pattern.permute.xlu1 %v1506_v57  ;;  %1444 = vset.pattern.permute.xlu0 %v1513_v0 }
 0x465   :  { %1042 = vperm.xlu1 %1440, %v1467_v28   ;;  %1066 = vperm.xlu0 %1444, %v1467_v28  }
 0x469   :  { %1442 = vset.pattern.permute.xlu1 %v1508_v59  ;;  %1447 = vset.pattern.permute.xlu0 %v1504_v17 }
 0x46a   :  { %1054 = vperm.xlu1 %1442, %v1467_v28  }
 0x46e   :  { %1443 = vset.pattern.permute.xlu1 %v1512_v63 }
 0x46f   :  { %1060 = vperm.xlu1 %1443, %v1467_v28  }
 0x473   :  { %1445 = vset.pattern.permute.xlu1 %v1505_v18 }
 0x4d5   :  { %v1019_v31 = vpop.permute.xlu1 %1018  ;;  %v1014_v32 = vpop.permute.xlu0 %1013 }
 0x4d6   :  { %v1021_v34 = vmul.f32 %v1609_v21, %v1019_v31  ;;  %v1016_v35 = vmul.f32 %v1604_v20, %v1014_v32 }
 0x4d8   :  { %v1022_v38 = vadd.f32 %v1021_v34, %v1016_v35  ;;  %v627_v35 = vadd.f32 %v1674_v50, %v1838_v2 }
 0x4da   :  { %v1025_v37 = vpop.permute.xlu1 %1024  ;;  %v1031_v17 = vpop.permute.xlu0 %1030 }
 0x4db   :  { %v1027_v40 = vmul.f32 %v1616_v24, %v1025_v37  ;;  %v1033_v43 = vmul.f32 %v1622_v27, %v1031_v17 }
 0x4dd   :  { %v1028_v41 = vadd.f32 %v1027_v40, %v1022_v38 }
 0x4df   :  { %v1037_v44 = vpop.permute.xlu1 %1036  ;;  %v1034_v46 = vadd.f32 %v1033_v43, %v1028_v41  ;;  %v1049_v51 = vpop.permute.xlu0 %1048 }
 0x4e0   :  { %v1039_v18 = vmul.f32 %v1628_v30, %v1037_v44  ;;  %v1051_v53 = vmul.f32 %v1640_v36, %v1049_v51 }
 0x4e2   :  { %v1040_v48 = vadd.f32 %v1039_v18, %v1034_v46 }
 0x4e4   :  { %v1043_v47 = vpop.permute.xlu1 %1042  ;;  %v1067_v5 = vpop.permute.xlu0 %1066 }
 0x4e5   :  { %v1045_v49 = vmul.f32 %v1634_v33, %v1043_v47  ;;  %v1069_v3 = vmul.f32 %v1658_v45, %v1067_v5 }
 0x4e7   :  { %v1046_v52 = vadd.f32 %v1045_v49, %v1040_v48 }
 0x4e9   :  { %v1055_v54 = vpop.permute.xlu1 %1054  ;;  %v1052_v55 = vadd.f32 %v1051_v53, %v1046_v52 }
 0x4ea   :  { %v1057_v56 = vmul.f32 %v1646_v39, %v1055_v54 }
 0x4ec   :  { %v1058_v8 = vadd.f32 %v1057_v56, %v1052_v55 }
 0x4ee   :  { %v1061_v7 = vpop.permute.xlu1 %1060 }
 0x4ef   :  { %v1063_v12 = vmul.f32 %v1652_v42, %v1061_v7 }
 0x4f1   :  { %v1064_v6 = vadd.f32 %v1063_v12, %v1058_v8 }
 0x4f3   :  { %v1070_v10 = vadd.f32 %v1069_v3, %v1064_v6 }
 0x4f5   :  { %v1071_v11 = vadd.f32 %v1070_v10, %v553_v9 }
 0x4f7   :  { %1468 = vtanh.f32 %v1071_v11 }
 0x501   :  { %v1469_v1 = vpop.eup %1468 }
 0x502   :  { %1086 = vperm.xlu0 %1447, %v1469_v1   ;;  %1075 = vperm.xlu1 %1445, %v1469_v1  }
 0x506   :  { %1450 = vset.pattern.permute.xlu0 %v1506_v57  ;;  %1446 = vset.pattern.permute.xlu1 %v1507_v58 }
 0x507   :  { %1104 = vperm.xlu0 %1450, %v1469_v1   ;;  %1080 = vperm.xlu1 %1446, %v1469_v1  }
 0x50b   :  { %1453 = vset.pattern.permute.xlu0 %v1512_v63  ;;  %1448 = vset.pattern.permute.xlu1 %v1509_v60 }
 0x50c   :  { %1122 = vperm.xlu0 %1453, %v1469_v1   ;;  %1092 = vperm.xlu1 %1448, %v1469_v1  }
 0x510   :  { %1449 = vset.pattern.permute.xlu1 %v1510_v61  ;;  %1455 = vset.pattern.permute.xlu0 %v1513_v0 }
 0x511   :  { %1098 = vperm.xlu1 %1449, %v1469_v1  }
 0x515   :  { %1451 = vset.pattern.permute.xlu1 %v1511_v62 }
 0x516   :  { %1110 = vperm.xlu1 %1451, %v1469_v1  }
 0x51a   :  { %1452 = vset.pattern.permute.xlu1 %v1508_v59 }
 0x51b   :  { %1116 = vperm.xlu1 %1452, %v1469_v1  }
 0x51f   :  { %1454 = vset.pattern.permute.xlu1 %v1513_v0 }
 0x520   :  { %1128 = vperm.xlu1 %1454, %v1469_v1  }
 0x581   :  { %v1076_v57 = vpop.permute.xlu1 %1075  ;;  %v1087_v4 = vpop.permute.xlu0 %1086 }
 0x582   :  { %v1078_v60 = vmul.f32 %v1604_v20, %v1076_v57  ;;  %v1089_v13 = vmul.f32 %v1616_v24, %v1087_v4 }
 0x586   :  { %v1081_v58 = vpop.permute.xlu1 %1080  ;;  %v1105_v0 = vpop.permute.xlu0 %1104 }
 0x587   :  { %v1083_v63 = vmul.f32 %v1609_v21, %v1081_v58  ;;  %v1107_v25 = vmul.f32 %v1634_v33, %v1105_v0 }
 0x589   :  { %v1084_v61 = vadd.f32 %v1083_v63, %v1078_v60 }
 0x58b   :  { %v1093_v14 = vpop.permute.xlu1 %1092  ;;  %v1090_v15 = vadd.f32 %v1089_v13, %v1084_v61  ;;  %v1123_v26 = vpop.permute.xlu0 %1122 }
 0x58c   :  { %v1095_v62 = vmul.f32 %v1622_v27, %v1093_v14  ;;  %v1125_v31 = vmul.f32 %v1652_v42, %v1123_v26 }
 0x58e   :  { %v1096_v59 = vadd.f32 %v1095_v62, %v1090_v15 }
 0x590   :  { %v1099_v19 = vpop.permute.xlu1 %1098 }
 0x591   :  { %v1101_v22 = vmul.f32 %v1628_v30, %v1099_v19 }
 0x593   :  { %v1102_v23 = vadd.f32 %v1101_v22, %v1096_v59 }
 0x595   :  { %v1111_v16 = vpop.permute.xlu1 %1110  ;;  %v1108_v20 = vadd.f32 %v1107_v25, %v1102_v23 }
 0x596   :  { %v1113_v21 = vmul.f32 %v1640_v36, %v1111_v16 }
 0x598   :  { %v1114_v29 = vadd.f32 %v1113_v21, %v1108_v20 }
 0x59a   :  { %v1117_v28 = vpop.permute.xlu1 %1116 }
 0x59b   :  { %v1119_v24 = vmul.f32 %v1646_v39, %v1117_v28 }
 0x59d   :  { %v1120_v27 = vadd.f32 %v1119_v24, %v1114_v29 }
 0x59f   :  { %v1126_v32 = vadd.f32 %v1125_v31, %v1120_v27  ;;  %v1129_v34 = vpop.permute.xlu1 %1128 }
 0x5a0   :  { %v1131_v30 = vmul.f32 %v1658_v45, %v1129_v34 }
 0x5a2   :  { %v1132_v33 = vadd.f32 %v1131_v30, %v1126_v32 }
 0x5a4   :  { %v1133_v37 = vadd.f32 %v1132_v33, %v627_v35 }
 0x5a6   :  { %1470 = vtanh.f32 %v1133_v37 }
 0x5b0   :  { %v1471_v36 = vpop.eup %1470 }
 0x5b1   :  { %1136 = vst.msk [vmem:[#allocation2] sm:$0x3] %vm1135_vm6, %v1471_v36 }
 0x5b2   :  { %1483 = shalt.err (!%p1480_p4)
}
 0x5b3   :  { %s1484_s22 = scalar_lea.hbm %s1887_s2, 32 }
 0x5b4   :  { %p1485_p5 = scmp.ne.s32.totalorder %s1887_s2, %s1484_s22  ;;  %p1488_p6 = scmp.lt.u32.totalorder %s1484_s22, %s1887_s2 }
 0x5b6   :  { %p1490_p7 = pnand %p1488_p6, %p1485_p5 }
 0x5b8   :  { %1493 = shalt.err (!%p1490_p7)
}
 0x5b9   :  { %1146 = dma.vmem_to_hbm [thread:$0]  %s1144_s19, 32, %s1887_s2, [#allocation3]  }
 0x5ba   :  { %1494 = dma.done.wait [#allocation3], 32  }
 0x5bb   :  { %1495 = vsyncadd [#allocation3], 4294967264 }
 0x5bc   :  { %1150 = vsyncpa [#allocation3], 1 }

</bundles_post_ra>
